<compile_context>
chip_gen: v5e
topology: v5e:2x2
jax: 0.10.0
libtpu: 0.0.40
codegen_flags: <defaults>
</compile_context>

<pallas_src>
import math

import jax
import jax.numpy as jnp
from jax.experimental import pallas as pl
from jax.experimental.pallas import tpu as pltpu


# ---------------------------------------------------------------------------
# Problem sizes (small, consistent with the module's forward signature)
# ---------------------------------------------------------------------------
B = 8                         # batch
C, H, W = 4, 16, 16           # img:  [B, 4, 16, 16] -> 1024 features
CS, HS, WS = 4, 8, 8          # scat: [B, 4,  8,  8] ->  256 features
COND = 16                     # condition: [B, 16]
IMG_F = C * H * W             # 1024
SCAT_F = CS * HS * WS         # 256
HID = 256                     # encoder / decoder hidden width
LAT = 128                     # latent dim
OUT_F = IMG_F                 # decoder reconstructs the image


# ---------------------------------------------------------------------------
# Pallas kernel: whole fused VAE forward (single program, activations + small
# weights auto-DMA'd to VMEM; wo manually prefetched from HBM to overlap)
# ---------------------------------------------------------------------------
def _cdual_vae_kernel(
    img_ref,      # [B, IMG_F]        f32
    scat_ref,     # [B, SCAT_F]       f32
    cond_ref,     # [B, COND]         f32
    eps_ref,      # [B, LAT]          f32   reparameterization noise
    w1i_ref,      # [IMG_F, HID]      bf16
    w1s_ref,      # [SCAT_F, HID]     bf16
    w1c_ref,      # [COND, HID]       bf16
    b1_ref,       # [1, HID]          f32
    wh_ref,       # [HID, 2*LAT]      bf16  fused (wmu | wlv)
    bh_ref,       # [1, 2*LAT]        f32   fused (bmu | blv)
    wd1_ref,      # [LAT, HID]        bf16  decoder z-path
    wc1_ref,      # [COND, HID]       bf16  decoder cond-path
    bd_ref,       # [1, HID]          f32
    wo_hbm_ref,   # [HID, OUT_F]      bf16  (HBM / pl.ANY — prefetched manually)
    bo_ref,       # [1, OUT_F]        f32
    xhat_ref,     # out: [B, OUT_F]   f32
    mean_ref,     # out: [B, LAT]     f32
    logvar_ref,   # out: [B, LAT]     f32
    wo_vmem,      # scratch: [HID, OUT_F] bf16
    wo_sem,       # scratch: DMA semaphore
):
    # Kick off the 512 KiB wo transfer immediately; it only has to land before
    # the final matmul, so it overlaps with everything below.
    wo_cp = pltpu.make_async_copy(wo_hbm_ref, wo_vmem, wo_sem)
    wo_cp.start()

    cond = cond_ref[...]
    eps = eps_ref[...]

    # ----- encoder: enc_h = relu(img@W1i + scat@W1s + cond@W1c + b1) -----
    # bf16 operands on the MXU, f32 accumulation; elementwise stays f32.
    enc_h = (
        jnp.dot(img_ref[...].astype(jnp.bfloat16), w1i_ref[...],
                preferred_element_type=jnp.float32)
        + jnp.dot(scat_ref[...].astype(jnp.bfloat16), w1s_ref[...],
                  preferred_element_type=jnp.float32)
        + jnp.dot(cond.astype(jnp.bfloat16), w1c_ref[...],
                  preferred_element_type=jnp.float32)
    )
    enc_h = jnp.maximum(enc_h + b1_ref[...], 0.0)

    # ----- fused latent heads: one [HID, 2*LAT] matmul, slice at lane 128 --
    heads = jnp.dot(enc_h.astype(jnp.bfloat16), wh_ref[...],
                    preferred_element_type=jnp.float32)
    heads = heads + bh_ref[...]
    mean = heads[:, :LAT]
    logvar = heads[:, LAT:]

    # ----- reparameterize: z = mean + eps * exp(0.5 * logvar) -----
    std = jnp.exp(0.5 * logvar)
    z = mean + eps * std

    # ----- decoder hidden: two clean K=128 / K=16 dots (no lane concat) -----
    dec_h = (
        jnp.dot(z.astype(jnp.bfloat16), wd1_ref[...],
                preferred_element_type=jnp.float32)
        + jnp.dot(cond.astype(jnp.bfloat16), wc1_ref[...],
                  preferred_element_type=jnp.float32)
    )
    dec_h = jnp.maximum(dec_h + bd_ref[...], 0.0)

    # ----- reconstruction: wait for the prefetched wo, then final matmul -----
    wo_cp.wait()
    logits = jnp.dot(dec_h.astype(jnp.bfloat16), wo_vmem[...],
                     preferred_element_type=jnp.float32)
    logits = logits + bo_ref[...]
    x_hat = jax.nn.sigmoid(logits)

    xhat_ref[...] = x_hat
    mean_ref[...] = mean
    logvar_ref[...] = logvar


def _nbytes(x):
    return math.prod(x.shape) * jnp.dtype(x.dtype).itemsize


@jax.jit
def cdual_vae_forward(img, scat, condition, eps, params):
    """Forward pass of CDual_VAE_Model. Returns (x_hat, mean, logvar)."""
    b = img.shape[0]
    img_flat = img.reshape(b, -1)
    scat_flat = scat.reshape(b, -1)

    args = (
        img_flat, scat_flat, condition, eps,
        params["w1_img"], params["w1_scat"], params["w1_cond"], params["b1"],
        params["w_heads"], params["b_heads"],
        params["wd1"], params["wc1"], params["b_dec"],
        params["wo"], params["bo"],
    )

    out_shapes = (
        jax.ShapeDtypeStruct((b, OUT_F), jnp.float32),
        jax.ShapeDtypeStruct((b, LAT), jnp.float32),
        jax.ShapeDtypeStruct((b, LAT), jnp.float32),
    )

    flops = 2 * b * (
        IMG_F * HID + SCAT_F * HID + COND * HID   # encoder layer 1
        + HID * (2 * LAT)                         # fused mean/logvar heads
        + (LAT + COND) * HID                      # decoder hidden
        + HID * OUT_F                             # reconstruction
    )
    transcendentals = b * (LAT + OUT_F)           # exp + sigmoid
    # bytes_accessed reflects actual (bf16) weight dtypes so XLA can schedule
    # this DMA-heavy, compute-light custom call correctly.
    bytes_accessed = (sum(_nbytes(a) for a in args)
                      + sum(_nbytes(s) for s in out_shapes))

    vmem = pl.BlockSpec(memory_space=pltpu.MemorySpace.VMEM)
    hbm = pl.BlockSpec(memory_space=pl.ANY)      # wo stays in HBM, manual DMA

    in_specs = [vmem] * 13 + [hbm, vmem]         # everything but wo -> VMEM

    x_hat, mean, logvar = pl.pallas_call(
        _cdual_vae_kernel,
        out_shape=out_shapes,
        in_specs=in_specs,
        out_specs=(vmem, vmem, vmem),
        scratch_shapes=[
            pltpu.VMEM((HID, OUT_F), jnp.bfloat16),   # wo landing buffer
            pltpu.SemaphoreType.DMA(()),              # wo DMA semaphore
        ],
        cost_estimate=pl.CostEstimate(
            flops=flops,
            transcendentals=transcendentals,
            bytes_accessed=bytes_accessed,
        ),
    )(*args)

    # back to NCHW image layout
    x_hat = x_hat.reshape(b, C, H, W)
    return x_hat, mean, logvar


def kl_divergence(x, mu, logvar):
    """Matches CDual_VAE_Model.kl_divergence (scalar, divided by batch)."""
    kld = -0.5 * jnp.sum(1.0 + logvar - jnp.square(mu) - jnp.exp(logvar))
    return kld / x.shape[0]


# ---------------------------------------------------------------------------
# Pure-JAX f32 reference (uses the same stored weights, cast up) for a
# tolerance check of the bf16-operand kernel.
# ---------------------------------------------------------------------------
def reference_forward(img, scat, condition, eps, params):
    f32 = lambda a: a.astype(jnp.float32)
    b = img.shape[0]
    img_flat = img.reshape(b, -1).astype(jnp.float32)
    scat_flat = scat.reshape(b, -1).astype(jnp.float32)

    enc_h = (img_flat @ f32(params["w1_img"])
             + scat_flat @ f32(params["w1_scat"])
             + condition @ f32(params["w1_cond"]))
    enc_h = jnp.maximum(enc_h + params["b1"], 0.0)

    heads = enc_h @ f32(params["w_heads"]) + params["b_heads"]
    mean, logvar = heads[:, :LAT], heads[:, LAT:]

    z = mean + eps * jnp.exp(0.5 * logvar)

    dec_h = z @ f32(params["wd1"]) + condition @ f32(params["wc1"])
    dec_h = jnp.maximum(dec_h + params["b_dec"], 0.0)

    logits = dec_h @ f32(params["wo"]) + params["bo"]
    x_hat = jax.nn.sigmoid(logits)
    return x_hat.reshape(b, C, H, W), mean, logvar


# ---------------------------------------------------------------------------
# Deterministic parameter init (synthetic; no checkpoint loading)
# NOTE: if real PyTorch checkpoints are ever loaded, nn.Linear weights are
# [out, in] (transpose needed), w_heads is [wmu | wlv] column-concat.
# ---------------------------------------------------------------------------
def init_params(key):
    ks = jax.random.split(key, 8)

    def lin(k, fan_in, fan_out, dtype=jnp.bfloat16):
        scale = 1.0 / jnp.sqrt(jnp.float32(fan_in))
        w = jax.random.uniform(k, (fan_in, fan_out), jnp.float32, -scale, scale)
        return w.astype(dtype)

    # encoder first layer, split per input (no host-side concat)
    w1_img = lin(ks[0], IMG_F, HID)
    w1_scat = lin(ks[1], SCAT_F, HID)
    w1_cond = lin(ks[2], COND, HID)

    # fused latent heads: (wmu | wlv) -> [HID, 2*LAT]
    wmu = lin(ks[3], HID, LAT, jnp.float32)
    wlv = lin(ks[4], HID, LAT, jnp.float32)
    w_heads = jnp.concatenate([wmu, wlv], axis=1).astype(jnp.bfloat16)

    # decoder input weights, kept separate (clean K=128 and K=16 dots)
    wd1 = lin(ks[5], LAT, HID)
    wc1 = lin(ks[6], COND, HID)

    # big output projection
    wo = lin(ks[7], HID, OUT_F)

    return {
        "w1_img": w1_img,
        "w1_scat": w1_scat,
        "w1_cond": w1_cond,
        "b1": jnp.zeros((1, HID), jnp.float32),
        "w_heads": w_heads,
        "b_heads": jnp.zeros((1, 2 * LAT), jnp.float32),
        "wd1": wd1,
        "wc1": wc1,
        "b_dec": jnp.zeros((1, HID), jnp.float32),
        "wo": wo,
        "bo": jnp.zeros((1, OUT_F), jnp.float32),
    }


if __name__ == "__main__":
    key = jax.random.PRNGKey(0)
    k_img, k_scat, k_cond, k_eps, k_par = jax.random.split(key, 5)

    img = jax.random.normal(k_img, (B, C, H, W), jnp.float32)
    scat = jax.random.normal(k_scat, (B, CS, HS, WS), jnp.float32)
    condition = jax.random.normal(k_cond, (B, COND), jnp.float32)
    # eps ~ N(0, 1): the `torch.randn_like(std)` of reparameterize
    eps = jax.random.normal(k_eps, (B, LAT), jnp.float32)

    params = init_params(k_par)

    x_hat, mean, logvar = cdual_vae_forward(img, scat, condition, eps, params)
    jax.block_until_ready((x_hat, mean, logvar))

    # sanity: shapes match the PyTorch forward's (x_hat, mean, logvar)
    assert x_hat.shape == (B, C, H, W)
    assert mean.shape == (B, LAT)
    assert logvar.shape == (B, LAT)
    assert bool(jnp.all(jnp.isfinite(x_hat)))

    # tolerance check vs pure-JAX f32 reference (bf16 MXU operands only)
    x_ref, m_ref, lv_ref = reference_forward(img, scat, condition, eps, params)
    assert float(jnp.max(jnp.abs(x_hat - x_ref))) < 3e-2
    assert float(jnp.max(jnp.abs(mean - m_ref))) < 8e-2
    assert float(jnp.max(jnp.abs(logvar - lv_ref))) < 8e-2

    _ = jax.block_until_ready(kl_divergence(img, mean, logvar))

    print("KERNEL_OK")
</pallas_src>

<mosaic_0001>
module attributes {stable_mosaic.version = 11 : i64} {
  func.func @_cdual_vae_kernel(%arg0: memref<8x1024xf32, #tpu.memory_space<vmem>>, %arg1: memref<8x256xf32, #tpu.memory_space<vmem>>, %arg2: memref<8x16xf32, #tpu.memory_space<vmem>>, %arg3: memref<8x128xf32, #tpu.memory_space<vmem>>, %arg4: memref<1024x256xbf16, #tpu.memory_space<vmem>>, %arg5: memref<256x256xbf16, #tpu.memory_space<vmem>>, %arg6: memref<16x256xbf16, #tpu.memory_space<vmem>>, %arg7: memref<1x256xf32, #tpu.memory_space<vmem>>, %arg8: memref<256x256xbf16, #tpu.memory_space<vmem>>, %arg9: memref<1x256xf32, #tpu.memory_space<vmem>>, %arg10: memref<128x256xbf16, #tpu.memory_space<vmem>>, %arg11: memref<16x256xbf16, #tpu.memory_space<vmem>>, %arg12: memref<1x256xf32, #tpu.memory_space<vmem>>, %arg13: memref<256x1024xbf16, #tpu.memory_space<any>>, %arg14: memref<1x1024xf32, #tpu.memory_space<vmem>>, %arg15: memref<8x1024xf32, #tpu.memory_space<vmem>>, %arg16: memref<8x128xf32, #tpu.memory_space<vmem>>, %arg17: memref<8x128xf32, #tpu.memory_space<vmem>>, %arg18: memref<256x1024xbf16, #tpu.memory_space<vmem>>, %arg19: memref<!tpu.dma_semaphore, #tpu.memory_space<semaphore_mem>>) attributes {dimension_semantics = [], scalar_prefetch = 0 : i64, scratch_operands = 2 : i64, tpu.core_type = #tpu.core_type<tc>} {
    tpu.enqueue_dma source(%arg13 : memref<256x1024xbf16, #tpu.memory_space<any>>) target(%arg18 : memref<256x1024xbf16, #tpu.memory_space<vmem>>) target_semaphore(%arg19 : memref<!tpu.dma_semaphore, #tpu.memory_space<semaphore_mem>>)
    %c0 = arith.constant 0 : index
    %c0_0 = arith.constant 0 : index
    %0 = vector.load %arg2[%c0, %c0_0] : memref<8x16xf32, #tpu.memory_space<vmem>>, vector<8x16xf32>
    %c0_1 = arith.constant 0 : index
    %c0_2 = arith.constant 0 : index
    %1 = vector.load %arg3[%c0_1, %c0_2] : memref<8x128xf32, #tpu.memory_space<vmem>>, vector<8x128xf32>
    %c0_3 = arith.constant 0 : index
    %c0_4 = arith.constant 0 : index
    %2 = vector.load %arg0[%c0_3, %c0_4] : memref<8x1024xf32, #tpu.memory_space<vmem>>, vector<8x1024xf32>
    %3 = arith.truncf %2 : vector<8x1024xf32> to vector<8x1024xbf16>
    %c0_5 = arith.constant 0 : index
    %c0_6 = arith.constant 0 : index
    %4 = vector.load %arg4[%c0_5, %c0_6] : memref<1024x256xbf16, #tpu.memory_space<vmem>>, vector<1024x256xbf16>
    %cst = arith.constant dense<0.000000e+00> : vector<8x256xf32>
    %5 = tpu.matmul %3, %4, %cst {dimension_numbers = #tpu.dot_dimension_numbers<[1], [0], [0], [1], [0, 0, 1, 1], [], []>} : vector<8x1024xbf16>, vector<1024x256xbf16>, vector<8x256xf32> -> vector<8x256xf32>
    %c0_7 = arith.constant 0 : index
    %c0_8 = arith.constant 0 : index
    %6 = vector.load %arg1[%c0_7, %c0_8] : memref<8x256xf32, #tpu.memory_space<vmem>>, vector<8x256xf32>
    %7 = arith.truncf %6 : vector<8x256xf32> to vector<8x256xbf16>
    %c0_9 = arith.constant 0 : index
    %c0_10 = arith.constant 0 : index
    %8 = vector.load %arg5[%c0_9, %c0_10] : memref<256x256xbf16, #tpu.memory_space<vmem>>, vector<256x256xbf16>
    %cst_11 = arith.constant dense<0.000000e+00> : vector<8x256xf32>
    %9 = tpu.matmul %7, %8, %cst_11 {dimension_numbers = #tpu.dot_dimension_numbers<[1], [0], [0], [1], [0, 0, 1, 1], [], []>} : vector<8x256xbf16>, vector<256x256xbf16>, vector<8x256xf32> -> vector<8x256xf32>
    %10 = arith.addf %5, %9 : vector<8x256xf32>
    %11 = arith.truncf %0 : vector<8x16xf32> to vector<8x16xbf16>
    %c0_12 = arith.constant 0 : index
    %c0_13 = arith.constant 0 : index
    %12 = vector.load %arg6[%c0_12, %c0_13] : memref<16x256xbf16, #tpu.memory_space<vmem>>, vector<16x256xbf16>
    %cst_14 = arith.constant dense<0.000000e+00> : vector<8x256xf32>
    %13 = tpu.matmul %11, %12, %cst_14 {dimension_numbers = #tpu.dot_dimension_numbers<[1], [0], [0], [1], [0, 0, 1, 1], [], []>} : vector<8x16xbf16>, vector<16x256xbf16>, vector<8x256xf32> -> vector<8x256xf32>
    %14 = arith.addf %10, %13 : vector<8x256xf32>
    %c0_15 = arith.constant 0 : index
    %c0_16 = arith.constant 0 : index
    %15 = vector.load %arg7[%c0_15, %c0_16] : memref<1x256xf32, #tpu.memory_space<vmem>>, vector<1x256xf32>
    %16 = vector.broadcast %15 : vector<1x256xf32> to vector<8x256xf32>
    %17 = arith.addf %14, %16 : vector<8x256xf32>
    %cst_17 = arith.constant 0.000000e+00 : f32
    %18 = vector.broadcast %cst_17 : f32 to vector<8x256xf32>
    %19 = arith.maximumf %17, %18 : vector<8x256xf32>
    %20 = arith.truncf %19 : vector<8x256xf32> to vector<8x256xbf16>
    %c0_18 = arith.constant 0 : index
    %c0_19 = arith.constant 0 : index
    %21 = vector.load %arg8[%c0_18, %c0_19] : memref<256x256xbf16, #tpu.memory_space<vmem>>, vector<256x256xbf16>
    %cst_20 = arith.constant dense<0.000000e+00> : vector<8x256xf32>
    %22 = tpu.matmul %20, %21, %cst_20 {dimension_numbers = #tpu.dot_dimension_numbers<[1], [0], [0], [1], [0, 0, 1, 1], [], []>} : vector<8x256xbf16>, vector<256x256xbf16>, vector<8x256xf32> -> vector<8x256xf32>
    %c0_21 = arith.constant 0 : index
    %c0_22 = arith.constant 0 : index
    %23 = vector.load %arg9[%c0_21, %c0_22] : memref<1x256xf32, #tpu.memory_space<vmem>>, vector<1x256xf32>
    %24 = vector.broadcast %23 : vector<1x256xf32> to vector<8x256xf32>
    %25 = arith.addf %22, %24 : vector<8x256xf32>
    %26 = vector.extract_strided_slice %25 {offsets = [0, 0], sizes = [8, 128], strides = [1, 1]} : vector<8x256xf32> to vector<8x128xf32>
    %27 = vector.extract_strided_slice %25 {offsets = [0, 128], sizes = [8, 128], strides = [1, 1]} : vector<8x256xf32> to vector<8x128xf32>
    %cst_23 = arith.constant 5.000000e-01 : f32
    %28 = vector.broadcast %cst_23 : f32 to vector<8x128xf32>
    %29 = arith.mulf %28, %27 : vector<8x128xf32>
    %30 = math.exp %29 : vector<8x128xf32>
    %31 = arith.mulf %1, %30 : vector<8x128xf32>
    %32 = arith.addf %26, %31 : vector<8x128xf32>
    %33 = arith.truncf %32 : vector<8x128xf32> to vector<8x128xbf16>
    %c0_24 = arith.constant 0 : index
    %c0_25 = arith.constant 0 : index
    %34 = vector.load %arg10[%c0_24, %c0_25] : memref<128x256xbf16, #tpu.memory_space<vmem>>, vector<128x256xbf16>
    %cst_26 = arith.constant dense<0.000000e+00> : vector<8x256xf32>
    %35 = tpu.matmul %33, %34, %cst_26 {dimension_numbers = #tpu.dot_dimension_numbers<[1], [0], [0], [1], [0, 0, 1, 1], [], []>} : vector<8x128xbf16>, vector<128x256xbf16>, vector<8x256xf32> -> vector<8x256xf32>
    %36 = arith.truncf %0 : vector<8x16xf32> to vector<8x16xbf16>
    %c0_27 = arith.constant 0 : index
    %c0_28 = arith.constant 0 : index
    %37 = vector.load %arg11[%c0_27, %c0_28] : memref<16x256xbf16, #tpu.memory_space<vmem>>, vector<16x256xbf16>
    %cst_29 = arith.constant dense<0.000000e+00> : vector<8x256xf32>
    %38 = tpu.matmul %36, %37, %cst_29 {dimension_numbers = #tpu.dot_dimension_numbers<[1], [0], [0], [1], [0, 0, 1, 1], [], []>} : vector<8x16xbf16>, vector<16x256xbf16>, vector<8x256xf32> -> vector<8x256xf32>
    %39 = arith.addf %35, %38 : vector<8x256xf32>
    %c0_30 = arith.constant 0 : index
    %c0_31 = arith.constant 0 : index
    %40 = vector.load %arg12[%c0_30, %c0_31] : memref<1x256xf32, #tpu.memory_space<vmem>>, vector<1x256xf32>
    %41 = vector.broadcast %40 : vector<1x256xf32> to vector<8x256xf32>
    %42 = arith.addf %39, %41 : vector<8x256xf32>
    %cst_32 = arith.constant 0.000000e+00 : f32
    %43 = vector.broadcast %cst_32 : f32 to vector<8x256xf32>
    %44 = arith.maximumf %42, %43 : vector<8x256xf32>
    tpu.wait_dma2 semaphore(%arg19 : memref<!tpu.dma_semaphore, #tpu.memory_space<semaphore_mem>>) src(%arg13 : memref<256x1024xbf16, #tpu.memory_space<any>>) dst(%arg18 : memref<256x1024xbf16, #tpu.memory_space<vmem>>)
    %45 = arith.truncf %44 : vector<8x256xf32> to vector<8x256xbf16>
    %c0_33 = arith.constant 0 : index
    %c0_34 = arith.constant 0 : index
    %46 = vector.load %arg18[%c0_33, %c0_34] : memref<256x1024xbf16, #tpu.memory_space<vmem>>, vector<256x1024xbf16>
    %cst_35 = arith.constant dense<0.000000e+00> : vector<8x1024xf32>
    %47 = tpu.matmul %45, %46, %cst_35 {dimension_numbers = #tpu.dot_dimension_numbers<[1], [0], [0], [1], [0, 0, 1, 1], [], []>} : vector<8x256xbf16>, vector<256x1024xbf16>, vector<8x1024xf32> -> vector<8x1024xf32>
    %c0_36 = arith.constant 0 : index
    %c0_37 = arith.constant 0 : index
    %48 = vector.load %arg14[%c0_36, %c0_37] : memref<1x1024xf32, #tpu.memory_space<vmem>>, vector<1x1024xf32>
    %49 = vector.broadcast %48 : vector<1x1024xf32> to vector<8x1024xf32>
    %50 = arith.addf %47, %49 : vector<8x1024xf32>
    %51 = arith.negf %50 : vector<8x1024xf32>
    %52 = math.exp %51 : vector<8x1024xf32>
    %cst_38 = arith.constant 1.000000e+00 : f32
    %53 = vector.broadcast %cst_38 : f32 to vector<8x1024xf32>
    %54 = arith.addf %53, %52 : vector<8x1024xf32>
    %55 = arith.divf %53, %54 : vector<8x1024xf32>
    %c0_39 = arith.constant 0 : index
    %c0_40 = arith.constant 0 : index
    %56 = vector.load %arg15[%c0_39, %c0_40] : memref<8x1024xf32, #tpu.memory_space<vmem>>, vector<8x1024xf32>
    tpu.vector_store %arg15[%c0_39, %c0_40], %55 {strides = array<i32>} : memref<8x1024xf32, #tpu.memory_space<vmem>>, vector<8x1024xf32>,
    %c0_41 = arith.constant 0 : index
    %c0_42 = arith.constant 0 : index
    %57 = vector.load %arg16[%c0_41, %c0_42] : memref<8x128xf32, #tpu.memory_space<vmem>>, vector<8x128xf32>
    tpu.vector_store %arg16[%c0_41, %c0_42], %26 {strides = array<i32>} : memref<8x128xf32, #tpu.memory_space<vmem>>, vector<8x128xf32>,
    %c0_43 = arith.constant 0 : index
    %c0_44 = arith.constant 0 : index
    %58 = vector.load %arg17[%c0_43, %c0_44] : memref<8x128xf32, #tpu.memory_space<vmem>>, vector<8x128xf32>
    tpu.vector_store %arg17[%c0_43, %c0_44], %27 {strides = array<i32>} : memref<8x128xf32, #tpu.memory_space<vmem>>, vector<8x128xf32>,
    return
  }
}

</mosaic_0001>

<bundles_post_ra>
// kernel: cdual_vae_forward.1
= control target key start
LH: loop header
LB: loop body
LE: loop exit
PB: predicated region body
PF: predicated region fallthrough
CT: control target
= control target key end

     0   :  { %s5663_s0 = inlined_call_operand.vmem [shape: f32[8,1024], index: 0, kind: input, shape index: {}]   ;;  %s5664_s1 = inlined_call_operand.vmem [shape: f32[8,256], index: 1, kind: input, shape index: {}]   ;;  %s5665_s2 = inlined_call_operand.vmem [shape: f32[8,16], index: 2, kind: input, shape index: {}]   ;;  %s5666_s3 = inlined_call_operand.vmem [shape: f32[8,128], index: 3, kind: input, shape index: {}]   ;;  %s5667_s4 = inlined_call_operand.hbm [shape: bf16[1024,256], index: 4, kind: input, shape index: {}]   ;;  %s5668_s5 = inlined_call_operand.vmem [shape: bf16[256,256], index: 5, kind: input, shape index: {}]   ;;  %s5669_s6 = inlined_call_operand.vmem [shape: bf16[16,256], index: 6, kind: input, shape index: {}]   ;;  %s5670_s7 = inlined_call_operand.vmem [shape: f32[1,256], index: 7, kind: input, shape index: {}]   ;;  %s5671_s8 = inlined_call_operand.vmem [shape: bf16[256,256], index: 8, kind: input, shape index: {}]   ;;  %s5672_s9 = inlined_call_operand.vmem [shape: f32[1,256], index: 9, kind: input, shape index: {}]   ;;  %s5673_s10 = inlined_call_operand.vmem [shape: bf16[128,256], index: 10, kind: input, shape index: {}]   ;;  %s5674_s11 = inlined_call_operand.vmem [shape: bf16[16,256], index: 11, kind: input, shape index: {}]   ;;  %s5675_s12 = inlined_call_operand.vmem [shape: f32[1,256], index: 12, kind: input, shape index: {}]   ;;  %s5676_s13 = inlined_call_operand.hbm [shape: bf16[256,1024], index: 13, kind: input, shape index: {}]   ;;  %s5677_s14 = inlined_call_operand.vmem [shape: f32[1,1024], index: 14, kind: input, shape index: {}]   ;;  %s5678_s15 = inlined_call_operand.vmem [shape: f32[8,1024], index: 15, kind: output, shape index: {0}]   ;;  %s5679_s16 = inlined_call_operand.hbm [shape: f32[8,128], index: 16, kind: output, shape index: {1}]   ;;  %s5680_s17 = inlined_call_operand.hbm [shape: f32[8,128], index: 17, kind: output, shape index: {2}]  }
   0x1   :  { %5683 = sst [smem:[#allocation18_spill]] %s5663_s0 }
   0x2   :  { %5684 = sst [smem:[#allocation19_spill]] %s5664_s1 }
   0x3   :  { %23 = vsyncpa [#allocation5], 0 }
   0x4   :  { %24 = vsyncpa [#allocation6], 0 }
   0x5   :  { %25 = vsyncpa [#allocation9], 0  ;;  %s38_s26 = sshll.u32 %s5667_s4, 4  ;;  %s4870_s27 = smov [#allocation4]   ;;  %s39_s26 = int_to_ptr.hbm [resolvable:$true] %s38_s26 }
   0x6   :  { %s40_s28 = sshll.u32 %s4870_s27, 4  ;;  %s4871_s29 = smov 128   ;;  %s41_s28 = int_to_ptr.vmem [resolvable:$true] %s40_s28 }
   0x7   :  { %s4872_s0 = smov 8  }
   0x8   :  { %46 = dma.hbm_to_vmem [thread:$0]  %s39_s26, 16384, %s41_s28, [#allocation5], %s4871_s29, %s4871_s29, %s4872_s0  }
   0x9   :  { %4862 = dma.done.wait [#allocation5], 16384  }
   0xa   :  { %4863 = vsyncadd [#allocation5], 4294950912  ;;  %v3071_v0 = vld [vmem:[%s5668_s5 + $0x70] sm:$0xf]  ;;  %v4529_v1 = vld [vmem:[%s5668_s5 + $0x74] sm:$0xf0] }
   0xb   :  { %v4528_v2 = vld [vmem:[%s5668_s5 + $0x74] sm:$0xf]  ;;  %v3072_v3 = vor.u32 %v4529_v1, %v3071_v0  ;;  %v3073_v4 = vld [vmem:[%s5668_s5 + $0x78] sm:$0xf0]  ;;  %v3135_v9 = vld [vmem:[%s5668_s5 + $0xf0] sm:$0xf] }
   0xc   :  { %v4544_v5 = vld [vmem:[%s5668_s5 + $0xf4] sm:$0xf]  ;;  %v3137_v6 = vld [vmem:[%s5668_s5 + $0xf8] sm:$0xf0]  ;;  %v3076_v7 = vor.u32 %v4528_v2, %v3073_v4  ;;  %v4545_v10 = vld [vmem:[%s5668_s5 + $0xf4] sm:$0xf0] }
   0xd   :  { %v3140_v8 = vor.u32 %v4544_v5, %v3137_v6  ;;  %v3063_v11 = vld [vmem:[%s5668_s5 + $0x60] sm:$0xf]  ;;  %425 = vmatpush.bf16.msra.mxu0 %v3072_v3  ;;  %v3136_v12 = vor.u32 %v4545_v10, %v3135_v9  ;;  %v4527_v13 = vld [vmem:[%s5668_s5 + $0x64] sm:$0xf0]  ;;  %v4526_v14 = vld [vmem:[%s5668_s5 + $0x64] sm:$0xf] }
   0xe   :  { %v3065_v15 = vld [vmem:[%s5668_s5 + $0x68] sm:$0xf0]  ;;  %451 = vmatpush.bf16.msra.mxu2 %v3076_v7  ;;  %v3064_v16 = vor.u32 %v4527_v13, %v3063_v11  ;;  %v4542_v18 = vld [vmem:[%s5668_s5 + $0xe4] sm:$0xf]  ;;  %v3127_v20 = vld [vmem:[%s5668_s5 + $0xe0] sm:$0xf] }
   0xf   :  { %464 = vmatpush.bf16.msra.mxu3 %v3140_v8  ;;  %v3068_v17 = vor.u32 %v4526_v14, %v3065_v15  ;;  %v3129_v19 = vld [vmem:[%s5668_s5 + $0xe8] sm:$0xf0]  ;;  %438 = vmatpush.bf16.msra.mxu1 %v3136_v12  ;;  %v4543_v22 = vld [vmem:[%s5668_s5 + $0xe4] sm:$0xf0]  ;;  %v3055_v23 = vld [vmem:[%s5668_s5 + $0x50] sm:$0xf] }
  0x10   :  { %v3132_v21 = vor.u32 %v4542_v18, %v3129_v19  ;;  %v4525_v24 = vld [vmem:[%s5668_s5 + $0x54] sm:$0xf0]  ;;  %v3128_v25 = vor.u32 %v4543_v22, %v3127_v20  ;;  %v4524_v26 = vld [vmem:[%s5668_s5 + $0x54] sm:$0xf]  ;;  %v3057_v27 = vld [vmem:[%s5668_s5 + $0x58] sm:$0xf0] }
  0x11   :  { %v4540_v28 = vld [vmem:[%s5668_s5 + $0xd4] sm:$0xf]  ;;  %426 = vmatpush.bf16.msra.mxu0 %v3064_v16  ;;  %v3056_v29 = vor.u32 %v4525_v24, %v3055_v23  ;;  %v3121_v30 = vld [vmem:[%s5668_s5 + $0xd8] sm:$0xf0]  ;;  %v3119_v31 = vld [vmem:[%s5668_s5 + $0xd0] sm:$0xf]  ;;  %v3060_v33 = vor.u32 %v4524_v26, %v3057_v27 }
  0x12   :  { %v4541_v32 = vld [vmem:[%s5668_s5 + $0xd4] sm:$0xf0]  ;;  %452 = vmatpush.bf16.msra.mxu2 %v3068_v17  ;;  %v3124_v34 = vor.u32 %v4540_v28, %v3121_v30  ;;  %v3047_v35 = vld [vmem:[%s5668_s5 + $0x40] sm:$0xf]  ;;  %v4523_v36 = vld [vmem:[%s5668_s5 + $0x44] sm:$0xf0] }
  0x13   :  { %465 = vmatpush.bf16.msra.mxu3 %v3132_v21  ;;  %v4522_v37 = vld [vmem:[%s5668_s5 + $0x44] sm:$0xf]  ;;  %439 = vmatpush.bf16.msra.mxu1 %v3128_v25  ;;  %v3120_v38 = vor.u32 %v4541_v32, %v3119_v31  ;;  %v3049_v39 = vld [vmem:[%s5668_s5 + $0x48] sm:$0xf0]  ;;  %v3111_v42 = vld [vmem:[%s5668_s5 + $0xc0] sm:$0xf]  ;;  %v3048_v44 = vor.u32 %v4523_v36, %v3047_v35 }
  0x14   :  { %v4538_v40 = vld [vmem:[%s5668_s5 + $0xc4] sm:$0xf]  ;;  %v3113_v41 = vld [vmem:[%s5668_s5 + $0xc8] sm:$0xf0]  ;;  %v4539_v43 = vld [vmem:[%s5668_s5 + $0xc4] sm:$0xf0]  ;;  %v3052_v45 = vor.u32 %v4522_v37, %v3049_v39 }
  0x15   :  { %427 = vmatpush.bf16.msra.mxu0 %v3056_v29  ;;  %v3116_v46 = vor.u32 %v4538_v40, %v3113_v41  ;;  %v3039_v47 = vld [vmem:[%s5668_s5 + $0x30] sm:$0xf]  ;;  %v4521_v48 = vld [vmem:[%s5668_s5 + $0x34] sm:$0xf0]  ;;  %v4520_v49 = vld [vmem:[%s5668_s5 + $0x34] sm:$0xf]  ;;  %v3112_v50 = vor.u32 %v4539_v43, %v3111_v42 }
  0x16   :  { %453 = vmatpush.bf16.msra.mxu2 %v3060_v33  ;;  %v3041_v51 = vld [vmem:[%s5668_s5 + $0x38] sm:$0xf0]  ;;  %v4536_v52 = vld [vmem:[%s5668_s5 + $0xb4] sm:$0xf]  ;;  %v3103_v54 = vld [vmem:[%s5668_s5 + $0xb0] sm:$0xf]  ;;  %v3040_v56 = vor.u32 %v4521_v48, %v3039_v47 }
  0x17   :  { %466 = vmatpush.bf16.msra.mxu3 %v3124_v34  ;;  %440 = vmatpush.bf16.msra.mxu1 %v3120_v38  ;;  %v3105_v53 = vld [vmem:[%s5668_s5 + $0xb8] sm:$0xf0]  ;;  %v4537_v55 = vld [vmem:[%s5668_s5 + $0xb4] sm:$0xf0]  ;;  %v3044_v57 = vor.u32 %v4520_v49, %v3041_v51  ;;  %v3031_v59 = vld [vmem:[%s5668_s5 + $0x20] sm:$0xf] }
  0x18   :  { %v3108_v58 = vor.u32 %v4536_v52, %v3105_v53  ;;  %v4519_v60 = vld [vmem:[%s5668_s5 + $0x24] sm:$0xf0]  ;;  %v4518_v61 = vld [vmem:[%s5668_s5 + $0x24] sm:$0xf]  ;;  %v3104_v62 = vor.u32 %v4537_v55, %v3103_v54  ;;  %v3033_v63 = vld [vmem:[%s5668_s5 + $0x28] sm:$0xf0] }
  0x19   :  { %428 = vmatpush.bf16.msra.mxu0 %v3048_v44  ;;  %v4534_v0 = vld [vmem:[%s5668_s5 + $0xa4] sm:$0xf]  ;;  %v3097_v1 = vld [vmem:[%s5668_s5 + $0xa8] sm:$0xf0]  ;;  %v3095_v2 = vld [vmem:[%s5668_s5 + $0xa0] sm:$0xf]  ;;  %v3032_v4 = vor.u32 %v4519_v60, %v3031_v59  ;;  %v3036_v5 = vor.u32 %v4518_v61, %v3033_v63 }
  0x1a   :  { %454 = vmatpush.bf16.msra.mxu2 %v3052_v45  ;;  %v4535_v3 = vld [vmem:[%s5668_s5 + $0xa4] sm:$0xf0]  ;;  %v3100_v6 = vor.u32 %v4534_v0, %v3097_v1  ;;  %v3023_v7 = vld [vmem:[%s5668_s5 + $0x10] sm:$0xf]  ;;  %v4517_v8 = vld [vmem:[%s5668_s5 + $0x14] sm:$0xf0] }
  0x1b   :  { %467 = vmatpush.bf16.msra.mxu3 %v3116_v46  ;;  %441 = vmatpush.bf16.msra.mxu1 %v3112_v50  ;;  %v4516_v9 = vld [vmem:[%s5668_s5 + $0x14] sm:$0xf]  ;;  %v3096_v10 = vor.u32 %v4535_v3, %v3095_v2  ;;  %v3025_v11 = vld [vmem:[%s5668_s5 + $0x18] sm:$0xf0]  ;;  %v3087_v14 = vld [vmem:[%s5668_s5 + $0x90] sm:$0xf]  ;;  %v3024_v16 = vor.u32 %v4517_v8, %v3023_v7 }
  0x1c   :  { %v4532_v12 = vld [vmem:[%s5668_s5 + $0x94] sm:$0xf]  ;;  %v3089_v13 = vld [vmem:[%s5668_s5 + $0x98] sm:$0xf0]  ;;  %v4533_v15 = vld [vmem:[%s5668_s5 + $0x94] sm:$0xf0]  ;;  %v3028_v19 = vor.u32 %v4516_v9, %v3025_v11 }
  0x1d   :  { %429 = vmatpush.bf16.msra.mxu0 %v3040_v56  ;;  %v3015_v17 = vld [vmem:[%s5668_s5] sm:$0xf]  ;;  %v4515_v18 = vld [vmem:[%s5668_s5 + $0x4] sm:$0xf0]  ;;  %v3092_v20 = vor.u32 %v4532_v12, %v3089_v13  ;;  %v4514_v21 = vld [vmem:[%s5668_s5 + $0x4] sm:$0xf]  ;;  %v3088_v24 = vor.u32 %v4533_v15, %v3087_v14 }
  0x1e   :  { %455 = vmatpush.bf16.msra.mxu2 %v3044_v57  ;;  %v3017_v22 = vld [vmem:[%s5668_s5 + $0x8] sm:$0xf0]  ;;  %v4530_v23 = vld [vmem:[%s5668_s5 + $0x84] sm:$0xf]  ;;  %v3199_v26 = vld [vmem:[#allocation4 + $0x70] sm:$0xf]  ;;  %v3016_v31 = vor.u32 %v4515_v18, %v3015_v17 }
  0x1f   :  { %468 = vmatpush.bf16.msra.mxu3 %v3108_v58  ;;  %442 = vmatpush.bf16.msra.mxu1 %v3104_v62  ;;  %v3081_v25 = vld [vmem:[%s5668_s5 + $0x88] sm:$0xf0]  ;;  %v4401_v27 = vld [vmem:[#allocation4 + $0x74] sm:$0xf0]  ;;  %v3327_v28 = vld [vmem:[#allocation4 + $0x170] sm:$0xf]  ;;  %v3020_v35 = vor.u32 %v4514_v21, %v3017_v22 }
  0x20   :  { %v4433_v29 = vld [vmem:[#allocation4 + $0x174] sm:$0xf0]  ;;  %v3391_v30 = vld [vmem:[#allocation4 + $0x1f0] sm:$0xf]  ;;  %v3079_v33 = vld [vmem:[%s5668_s5 + $0x80] sm:$0xf]  ;;  %v3084_v36 = vor.u32 %v4530_v23, %v3081_v25  ;;  %v3200_v39 = vor.u32 %v4401_v27, %v3199_v26 }
  0x21   :  { %430 = vmatpush.bf16.msra.mxu0 %v3032_v4  ;;  %v4449_v32 = vld [vmem:[#allocation4 + $0x1f4] sm:$0xf0]  ;;  %v4531_v34 = vld [vmem:[%s5668_s5 + $0x84] sm:$0xf0]  ;;  %v3263_v37 = vld [vmem:[#allocation4 + $0xf0] sm:$0xf]  ;;  %v3328_v40 = vor.u32 %v4433_v29, %v3327_v28 }
  0x22   :  { %456 = vmatpush.bf16.msra.mxu2 %v3036_v5  ;;  %v4417_v38 = vld [vmem:[#allocation4 + $0xf4] sm:$0xf0]  ;;  %v3191_v41 = vld [vmem:[#allocation4 + $0x60] sm:$0xf]  ;;  %v3392_v42 = vor.u32 %v4449_v32, %v3391_v30  ;;  %v3080_v43 = vor.u32 %v4531_v34, %v3079_v33  ;;  %v4399_v44 = vld [vmem:[#allocation4 + $0x64] sm:$0xf0] }
  0x23   :  { %469 = vmatpush.bf16.msra.mxu3 %v3100_v6  ;;  %443 = vmatpush.bf16.msra.mxu1 %v3096_v10  ;;  %v3319_v45 = vld [vmem:[#allocation4 + $0x160] sm:$0xf]  ;;  %v4431_v46 = vld [vmem:[#allocation4 + $0x164] sm:$0xf0]  ;;  %v3264_v47 = vor.u32 %v4417_v38, %v3263_v37  ;;  %v3192_v52 = vor.u32 %v4399_v44, %v3191_v41  ;;  %v3183_v54 = vld [vmem:[#allocation4 + $0x50] sm:$0xf] }
  0x24   :  { %v3383_v48 = vld [vmem:[#allocation4 + $0x1e0] sm:$0xf]  ;;  %v4447_v49 = vld [vmem:[#allocation4 + $0x1e4] sm:$0xf0]  ;;  %v3320_v53 = vor.u32 %v4431_v46, %v3319_v45  ;;  %v4397_v56 = vld [vmem:[#allocation4 + $0x54] sm:$0xf0] }
  0x25   :  { %431 = vmatpush.bf16.msra.mxu0 %v3024_v16  ;;  %v3255_v50 = vld [vmem:[#allocation4 + $0xe0] sm:$0xf]  ;;  %v4415_v51 = vld [vmem:[#allocation4 + $0xe4] sm:$0xf0]  ;;  %v3384_v55 = vor.u32 %v4447_v49, %v3383_v48  ;;  %v3311_v57 = vld [vmem:[#allocation4 + $0x150] sm:$0xf]  ;;  %v3184_v1 = vor.u32 %v4397_v56, %v3183_v54 }
  0x26   :  { %457 = vmatpush.bf16.msra.mxu2 %v3028_v19  ;;  %v4429_v58 = vld [vmem:[#allocation4 + $0x154] sm:$0xf0]  ;;  %v3256_v59 = vor.u32 %v4415_v51, %v3255_v50  ;;  %v3375_v60 = vld [vmem:[#allocation4 + $0x1d0] sm:$0xf]  ;;  %s5685_s18 = sld [smem:[#allocation19_spill]]  ;;  %vm1338_vm0 = vcmask 130048  }
  0x27   :  { %470 = vmatpush.bf16.msra.mxu3 %v3092_v20  ;;  %444 = vmatpush.bf16.msra.mxu1 %v3088_v24  ;;  %v4445_v61 = vld [vmem:[#allocation4 + $0x1d4] sm:$0xf0]  ;;  %v3247_v62 = vld [vmem:[#allocation4 + $0xd0] sm:$0xf]  ;;  %v3312_v2 = vor.u32 %v4429_v58, %v3311_v57  ;;  %v3175_v3 = vld [vmem:[#allocation4 + $0x40] sm:$0xf] }
  0x28   :  { %v4413_v63 = vld [vmem:[#allocation4 + $0xd4] sm:$0xf0]  ;;  %v3376_v6 = vor.u32 %v4445_v61, %v3375_v60  ;;  %v4395_v7 = vld [vmem:[#allocation4 + $0x44] sm:$0xf0]  ;;  %v3303_v8 = vld [vmem:[#allocation4 + $0x140] sm:$0xf] }
  0x29   :  { %432 = vmatpush.bf16.msra.mxu0 %v3016_v31  ;;  %v4427_v9 = vld [vmem:[#allocation4 + $0x144] sm:$0xf0]  ;;  %v3248_v11 = vor.u32 %v4413_v63, %v3247_v62  ;;  %v3367_v12 = vld [vmem:[#allocation4 + $0x1c0] sm:$0xf]  ;;  %v3176_v16 = vor.u32 %v4395_v7, %v3175_v3  ;;  %v3167_v18 = vld [vmem:[#allocation4 + $0x30] sm:$0xf] }
  0x2a   :  { %458 = vmatpush.bf16.msra.mxu2 %v3020_v35  ;;  %v4443_v13 = vld [vmem:[#allocation4 + $0x1c4] sm:$0xf0]  ;;  %v3239_v14 = vld [vmem:[#allocation4 + $0xc0] sm:$0xf]  ;;  %v3304_v17 = vor.u32 %v4427_v9, %v3303_v8  ;;  %v4393_v20 = vld [vmem:[#allocation4 + $0x34] sm:$0xf0] }
  0x2b   :  { %471 = vmatpush.bf16.msra.mxu3 %v3084_v36  ;;  %445 = vmatpush.bf16.msra.mxu1 %v3080_v43  ;;  %v4411_v15 = vld [vmem:[#allocation4 + $0xc4] sm:$0xf0]  ;;  %v3368_v19 = vor.u32 %v4443_v13, %v3367_v12  ;;  %v3295_v21 = vld [vmem:[#allocation4 + $0x130] sm:$0xf]  ;;  %v4425_v22 = vld [vmem:[#allocation4 + $0x134] sm:$0xf0]  ;;  %v3168_v28 = vor.u32 %v4393_v20, %v3167_v18 }
  0x2c   :  { %v229_v0 = vld [vmem:[%s5685_s18] sm:$0xff]  ;;  %v230_v5 = vld [vmem:[%s5685_s18 + $0x8] sm:$0xff]  ;;  %v3240_v23 = vor.u32 %v4411_v15, %v3239_v14  ;;  %v3359_v24 = vld [vmem:[#allocation4 + $0x1b0] sm:$0xf]  ;;  %v3296_v29 = vor.u32 %v4425_v22, %v3295_v21  ;;  %s5686_s4 = sld [smem:[#allocation18_spill]]  ;;  %s77_s19 = sshll.u32 %s5676_s13, 4  ;;  %s78_s19 = int_to_ptr.hbm [resolvable:$true] %s77_s19 }
  0x2d   :  { %1117 = vmatpush.bf16.msrb.mxu0 %v3200_v39  ;;  %v231_v4 = vpack.c.bf16 %v229_v0, %v229_v0  ;;  %v232_v10 = vpack.c.bf16 %v230_v5, %v230_v5  ;;  %v4441_v25 = vld [vmem:[#allocation4 + $0x1b4] sm:$0xf0]  ;;  %v3231_v26 = vld [vmem:[#allocation4 + $0xb0] sm:$0xf]  ;;  %v3159_v30 = vld [vmem:[#allocation4 + $0x20] sm:$0xf] }
  0x2e   :  { %1143 = vmatpush.bf16.msrb.mxu2 %v3328_v40  ;;  %v4409_v27 = vld [vmem:[#allocation4 + $0xb4] sm:$0xf0]  ;;  %v3360_v31 = vor.u32 %v4441_v25, %v3359_v24  ;;  %v4391_v32 = vld [vmem:[#allocation4 + $0x24] sm:$0xf0]  ;;  %v3287_v33 = vld [vmem:[#allocation4 + $0x120] sm:$0xf] }
  0x2f   :  { %1156 = vmatpush.bf16.msrb.mxu3 %v3392_v42  ;;  %1130 = vmatpush.bf16.msrb.mxu1 %v3264_v47  ;;  %v4423_v34 = vld [vmem:[#allocation4 + $0x124] sm:$0xf0]  ;;  %v3232_v35 = vor.u32 %v4409_v27, %v3231_v26  ;;  %v3351_v36 = vld [vmem:[#allocation4 + $0x1a0] sm:$0xf]  ;;  %v3160_v40 = vor.u32 %v4391_v32, %v3159_v30  ;;  %v3151_v42 = vld [vmem:[#allocation4 + $0x10] sm:$0xf] }
  0x30   :  { %459 = vmatmul.bf16.vlgmr.msra.gmra.mxu2 %v231_v4  ;;  %472 = vmatmul.bf16.vlgmr.msra.gmra.mxu3 %v232_v10  ;;  %v4439_v37 = vld [vmem:[#allocation4 + $0x1a4] sm:$0xf0]  ;;  %v3223_v38 = vld [vmem:[#allocation4 + $0xa0] sm:$0xf]  ;;  %v3288_v41 = vor.u32 %v4423_v34, %v3287_v33  ;;  %v4389_v44 = vld [vmem:[#allocation4 + $0x14] sm:$0xf0] }
  0x31   :  { %1118 = vmatpush.bf16.msrb.mxu0 %v3192_v52  ;;  %446 = vmatmul.bf16.vlgmr.msra.gmra.mxu1 %v232_v10  ;;  %v4407_v39 = vld [vmem:[#allocation4 + $0xa4] sm:$0xf0]  ;;  %v3352_v43 = vor.u32 %v4439_v37, %v3351_v36  ;;  %v3279_v45 = vld [vmem:[#allocation4 + $0x110] sm:$0xf]  ;;  %v4421_v46 = vld [vmem:[#allocation4 + $0x114] sm:$0xf0] }
  0x32   :  { %1144 = vmatpush.bf16.msrb.mxu2 %v3320_v53  ;;  %433 = vmatmul.bf16.vlgmr.msra.gmra.mxu0 %v231_v4  ;;  %v3224_v47 = vor.u32 %v4407_v39, %v3223_v38  ;;  %v3343_v48 = vld [vmem:[#allocation4 + $0x190] sm:$0xf]  ;;  %v4437_v49 = vld [vmem:[#allocation4 + $0x194] sm:$0xf0]  ;;  %v3143_v52 = vld [vmem:[#allocation4] sm:$0xf]  ;;  %v3152_v53 = vor.u32 %v4389_v44, %v3151_v42  ;;  %v3280_v54 = vor.u32 %v4421_v46, %v3279_v45 }
  0x33   :  { %1157 = vmatpush.bf16.msrb.mxu3 %v3384_v55  ;;  %1131 = vmatpush.bf16.msrb.mxu1 %v3256_v59  ;;  %v3215_v50 = vld [vmem:[#allocation4 + $0x90] sm:$0xf]  ;;  %v4405_v51 = vld [vmem:[#allocation4 + $0x94] sm:$0xf0]  ;;  %v4387_v55 = vld [vmem:[#allocation4 + $0x4] sm:$0xf0]  ;;  %v3344_v58 = vor.u32 %v4437_v49, %v3343_v48 }
  0x34   :  { %v3271_v56 = vld [vmem:[#allocation4 + $0x100] sm:$0xf]  ;;  %v4419_v57 = vld [vmem:[#allocation4 + $0x104] sm:$0xf0]  ;;  %v3455_v61 = vld [vmem:[#allocation4 + $0x270] sm:$0xf]  ;;  %v3216_v62 = vor.u32 %v4405_v51, %v3215_v50  ;;  %v3144_v5 = vor.u32 %v4387_v55, %v3143_v52 }
  0x35   :  { %1119 = vmatpush.bf16.msrb.mxu0 %v3184_v1  ;;  %v3335_v59 = vld [vmem:[#allocation4 + $0x180] sm:$0xf]  ;;  %v4435_v60 = vld [vmem:[#allocation4 + $0x184] sm:$0xf0]  ;;  %v4465_v63 = vld [vmem:[#allocation4 + $0x274] sm:$0xf0] }
  0x36   :  { %1145 = vmatpush.bf16.msrb.mxu2 %v3312_v2  ;;  %v3583_v0 = vld [vmem:[#allocation4 + $0x370] sm:$0xf]  ;;  %v4497_v1 = vld [vmem:[#allocation4 + $0x374] sm:$0xf0]  ;;  %v3207_v4 = vld [vmem:[#allocation4 + $0x80] sm:$0xf]  ;;  %v3336_v10 = vor.u32 %v4435_v60, %v3335_v59 }
  0x37   :  { %1158 = vmatpush.bf16.msrb.mxu3 %v3376_v6  ;;  %1132 = vmatpush.bf16.msrb.mxu1 %v3248_v11  ;;  %v3647_v2 = vld [vmem:[#allocation4 + $0x3f0] sm:$0xf]  ;;  %v4513_v3 = vld [vmem:[#allocation4 + $0x3f4] sm:$0xf0]  ;;  %v3272_v6 = vor.u32 %v4419_v57, %v3271_v56  ;;  %v4403_v7 = vld [vmem:[#allocation4 + $0x84] sm:$0xf0]  ;;  %v3456_v11 = vor.u32 %v4465_v63, %v3455_v61  ;;  %v3584_v15 = vor.u32 %v4497_v1, %v3583_v0 }
  0x38   :  { %v3519_v8 = vld [vmem:[#allocation4 + $0x2f0] sm:$0xf]  ;;  %v85_v9 = vld [vmem:[%s5686_s4] sm:$0xff]  ;;  %v4481_v12 = vld [vmem:[#allocation4 + $0x2f4] sm:$0xf0]  ;;  %v3208_v20 = vor.u32 %v4403_v7, %v3207_v4  ;;  %s4873_s1 = smov [#allocation2]  }
  0x39   :  { %1120 = vmatpush.bf16.msrb.mxu0 %v3176_v16  ;;  %v3447_v13 = vld [vmem:[#allocation4 + $0x260] sm:$0xf]  ;;  %v87_v14 = vld [vmem:[%s5686_s4 + $0x10] sm:$0xff]  ;;  %v3648_v16 = vor.u32 %v4513_v3, %v3647_v2  ;;  %v4495_v21 = vld [vmem:[#allocation4 + $0x364] sm:$0xf0]  ;;  %v5176_v24 = vpack.c.bf16 %v85_v9, %v85_v9  ;;  %v3520_v25 = vor.u32 %v4481_v12, %v3519_v8  ;;  %s79_s20 = sshll.u32 %s4873_s1, 4  ;;  %s80_s20 = int_to_ptr.vmem [resolvable:$true] %s79_s20 }
  0x3a   :  { %1146 = vmatpush.bf16.msrb.mxu2 %v3304_v17  ;;  %v4463_v17 = vld [vmem:[#allocation4 + $0x264] sm:$0xf0]  ;;  %v3575_v18 = vld [vmem:[#allocation4 + $0x360] sm:$0xf]  ;;  %v5178_v26 = vpack.c.bf16 %v87_v14, %v87_v14  ;;  %v3439_v34 = vld [vmem:[#allocation4 + $0x250] sm:$0xf] }
  0x3b   :  { %1159 = vmatpush.bf16.msrb.mxu3 %v3368_v19  ;;  %1133 = vmatpush.bf16.msrb.mxu1 %v3240_v23  ;;  %v88_v19 = vld [vmem:[%s5686_s4 + $0x18] sm:$0xff]  ;;  %v3639_v22 = vld [vmem:[#allocation4 + $0x3e0] sm:$0xf]  ;;  %v4511_v23 = vld [vmem:[#allocation4 + $0x3e4] sm:$0xf0]  ;;  %v3576_v32 = vor.u32 %v4495_v21, %v3575_v18 }
  0x3c   :  { %v86_v27 = vld [vmem:[%s5686_s4 + $0x8] sm:$0xff]  ;;  %v3640_v33 = vor.u32 %v4511_v23, %v3639_v22  ;;  %v3567_v36 = vld [vmem:[#allocation4 + $0x350] sm:$0xf]  ;;  %v4493_v37 = vld [vmem:[#allocation4 + $0x354] sm:$0xf0] }
  0x3d   :  { %1121 = vmatpush.bf16.msrb.mxu0 %v3168_v28  ;;  %v3448_v28 = vor.u32 %v4463_v17, %v3447_v13  ;;  %v4479_v30 = vld [vmem:[#allocation4 + $0x2e4] sm:$0xf0]  ;;  %v3631_v38 = vld [vmem:[#allocation4 + $0x3d0] sm:$0xf]  ;;  %v4509_v39 = vld [vmem:[#allocation4 + $0x3d4] sm:$0xf0]  ;;  %v3568_v45 = vor.u32 %v4493_v37, %v3567_v36 }
  0x3e   :  { %1147 = vmatpush.bf16.msrb.mxu2 %v3296_v29  ;;  %v3511_v29 = vld [vmem:[#allocation4 + $0x2e0] sm:$0xf]  ;;  %v4477_v44 = vld [vmem:[#allocation4 + $0x2d4] sm:$0xf0]  ;;  %v3632_v46 = vor.u32 %v4509_v39, %v3631_v38  ;;  %v4459_v48 = vld [vmem:[#allocation4 + $0x244] sm:$0xf0] }
  0x3f   :  { %1160 = vmatpush.bf16.msrb.mxu3 %v3360_v31  ;;  %1134 = vmatpush.bf16.msrb.mxu1 %v3232_v35  ;;  %v5183_v31 = vpack.c.bf16 %v88_v19, %v88_v19  ;;  %v4461_v35 = vld [vmem:[#allocation4 + $0x254] sm:$0xf0]  ;;  %v3559_v49 = vld [vmem:[#allocation4 + $0x340] sm:$0xf]  ;;  %v4491_v50 = vld [vmem:[#allocation4 + $0x344] sm:$0xf0] }
  0x40   :  { %v3440_v42 = vor.u32 %v4461_v35, %v3439_v34  ;;  %v3623_v51 = vld [vmem:[#allocation4 + $0x3c0] sm:$0xf]  ;;  %v4507_v52 = vld [vmem:[#allocation4 + $0x3c4] sm:$0xf0]  ;;  %v3560_v57 = vor.u32 %v4491_v50, %v3559_v49  ;;  %v3423_v59 = vld [vmem:[#allocation4 + $0x230] sm:$0xf] }
  0x41   :  { %1122 = vmatpush.bf16.msrb.mxu0 %v3160_v40  ;;  %v5186_v40 = vpack.c.bf16 %v86_v27, %v86_v27  ;;  %v3495_v55 = vld [vmem:[#allocation4 + $0x2c0] sm:$0xf]  ;;  %v4475_v56 = vld [vmem:[#allocation4 + $0x2c4] sm:$0xf0]  ;;  %v4457_v60 = vld [vmem:[#allocation4 + $0x234] sm:$0xf0] }
  0x42   :  { %1148 = vmatpush.bf16.msrb.mxu2 %v3288_v41  ;;  %v3512_v41 = vor.u32 %v4479_v30, %v3511_v29  ;;  %v3551_v61 = vld [vmem:[#allocation4 + $0x330] sm:$0xf]  ;;  %v4505_v0 = vld [vmem:[#allocation4 + $0x3b4] sm:$0xf0]  ;;  %v3496_v1 = vor.u32 %v4475_v56, %v3495_v55  ;;  %v3424_v2 = vor.u32 %v4457_v60, %v3423_v59  ;;  %v3415_v7 = vld [vmem:[#allocation4 + $0x220] sm:$0xf] }
  0x43   :  { %1161 = vmatpush.bf16.msrb.mxu3 %v3352_v43  ;;  %1135 = vmatpush.bf16.msrb.mxu1 %v3224_v47  ;;  %v3503_v43 = vld [vmem:[#allocation4 + $0x2d0] sm:$0xf]  ;;  %v3431_v47 = vld [vmem:[#allocation4 + $0x240] sm:$0xf]  ;;  %v4473_v4 = vld [vmem:[#allocation4 + $0x2b4] sm:$0xf0] }
  0x44   :  { %v3615_v63 = vld [vmem:[#allocation4 + $0x3b0] sm:$0xf]  ;;  %v4455_v8 = vld [vmem:[#allocation4 + $0x224] sm:$0xf0]  ;;  %v3543_v9 = vld [vmem:[#allocation4 + $0x320] sm:$0xf] }
  0x45   :  { %1123 = vmatpush.bf16.msrb.mxu0 %v3152_v53  ;;  %v3504_v53 = vor.u32 %v4477_v44, %v3503_v43  ;;  %v3487_v3 = vld [vmem:[#allocation4 + $0x2b0] sm:$0xf]  ;;  %v4503_v12 = vld [vmem:[#allocation4 + $0x3a4] sm:$0xf0]  ;;  %v3416_v14 = vor.u32 %v4455_v8, %v3415_v7  ;;  %v4485_v22 = vld [vmem:[#allocation4 + $0x314] sm:$0xf0] }
  0x46   :  { %1149 = vmatpush.bf16.msrb.mxu2 %v3280_v54  ;;  %v3432_v54 = vor.u32 %v4459_v48, %v3431_v47  ;;  %v3488_v13 = vor.u32 %v4473_v4, %v3487_v3  ;;  %v3407_v19 = vld [vmem:[#allocation4 + $0x210] sm:$0xf]  ;;  %v4469_v30 = vld [vmem:[#allocation4 + $0x294] sm:$0xf0]  ;;  %v3527_v36 = vld [vmem:[#allocation4 + $0x300] sm:$0xf] }
  0x47   :  { %1162 = vmatpush.bf16.msrb.mxu3 %v3344_v58  ;;  %1136 = vmatpush.bf16.msrb.mxu1 %v3216_v62  ;;  %v3624_v58 = vor.u32 %v4507_v52, %v3623_v51  ;;  %v4489_v62 = vld [vmem:[#allocation4 + $0x334] sm:$0xf0]  ;;  %v3535_v21 = vld [vmem:[#allocation4 + $0x310] sm:$0xf]  ;;  %v4483_v37 = vld [vmem:[#allocation4 + $0x304] sm:$0xf0] }
  0x48   :  { %v3599_v23 = vld [vmem:[#allocation4 + $0x390] sm:$0xf]  ;;  %v3536_v34 = vor.u32 %v4485_v22, %v3535_v21  ;;  %v3591_v38 = vld [vmem:[#allocation4 + $0x380] sm:$0xf]  ;;  %v4499_v39 = vld [vmem:[#allocation4 + $0x384] sm:$0xf0]  ;;  %v3528_v51 = vor.u32 %v4483_v37, %v3527_v36 }
  0x49   :  { %1124 = vmatpush.bf16.msrb.mxu0 %v3144_v5  ;;  %v3552_v5 = vor.u32 %v4489_v62, %v3551_v61  ;;  %v4432_v44 = vld [vmem:[#allocation4 + $0x174] sm:$0xf]  ;;  %v3393_v48 = vld [vmem:[#allocation4 + $0x1f8] sm:$0xf0]  ;;  %v3463_v49 = vld [vmem:[#allocation4 + $0x280] sm:$0xf]  ;;  %v3592_v52 = vor.u32 %v4499_v39, %v3591_v38 }
  0x4a   :  { %1150 = vmatpush.bf16.msrb.mxu2 %v3272_v6  ;;  %v3616_v6 = vor.u32 %v4505_v0, %v3615_v63  ;;  %v4467_v50 = vld [vmem:[#allocation4 + $0x284] sm:$0xf0]  ;;  %v4416_v55 = vld [vmem:[#allocation4 + $0xf4] sm:$0xf]  ;;  %v92_v60 = vld [vmem:[%s5686_s4 + $0x38] sm:$0xff] }
  0x4b   :  { %1163 = vmatpush.bf16.msrb.mxu3 %v3336_v10  ;;  %1137 = vmatpush.bf16.msrb.mxu1 %v3208_v20  ;;  %v4487_v10 = vld [vmem:[#allocation4 + $0x324] sm:$0xf0]  ;;  %v4453_v20 = vld [vmem:[#allocation4 + $0x214] sm:$0xf0]  ;;  %v3464_v62 = vor.u32 %v4467_v50, %v3463_v49  ;;  %v4398_v63 = vld [vmem:[#allocation4 + $0x64] sm:$0xf]  ;;  %v5207_v8 = vpack.c.bf16 %v92_v60, %v92_v60 }
  0x4c   :  { %1125 = vmatmul.bf16.vlgmr.msrb.gmra.mxu0 %v5176_v24  ;;  %v3544_v17 = vor.u32 %v4487_v10, %v3543_v9  ;;  %v3408_v29 = vor.u32 %v4453_v20, %v3407_v19  ;;  %v90_v59 = vld [vmem:[%s5686_s4 + $0x28] sm:$0xff]  ;;  %v4444_v19 = vld [vmem:[#allocation4 + $0x1d4] sm:$0xf]  ;;  %v3377_v20 = vld [vmem:[#allocation4 + $0x1d8] sm:$0xf0] }
  0x4d   :  { %1169 = vmatpush.bf16.msra.mxu0 %v3456_v11  ;;  %1151 = vmatmul.bf16.vlgmr.msrb.gmra.mxu2 %v5178_v26  ;;  %v3607_v11 = vld [vmem:[#allocation4 + $0x3a0] sm:$0xf]  ;;  %v3193_v0 = vld [vmem:[#allocation4 + $0x68] sm:$0xf0]  ;;  %v5209_v9 = vpack.c.bf16 %v90_v59, %v90_v59  ;;  %v4410_v38 = vld [vmem:[#allocation4 + $0xc4] sm:$0xf] }
  0x4e   :  { %1195 = vmatpush.bf16.msra.mxu2 %v3584_v15  ;;  %1164 = vmatmul.bf16.vlgmr.msrb.gmra.mxu3 %v5183_v31  ;;  %v3479_v15 = vld [vmem:[#allocation4 + $0x2a0] sm:$0xf]  ;;  %v3608_v18 = vor.u32 %v4503_v12, %v3607_v11  ;;  %v3321_v4 = vld [vmem:[#allocation4 + $0x168] sm:$0xf0]  ;;  %v3196_v10 = vor.u32 %v4398_v63, %v3193_v0  ;;  %v4414_v11 = vld [vmem:[#allocation4 + $0xe4] sm:$0xf] }
  0x4f   :  { %1208 = vmatpush.bf16.msra.mxu3 %v3648_v16  ;;  %1182 = vmatpush.bf16.msra.mxu1 %v3520_v25  ;;  %v4471_v16 = vld [vmem:[#allocation4 + $0x2a4] sm:$0xf0]  ;;  %v4501_v25 = vld [vmem:[#allocation4 + $0x394] sm:$0xf0]  ;;  %v3257_v12 = vld [vmem:[#allocation4 + $0xe8] sm:$0xf0] }
  0x50   :  { %1138 = vmatmul.bf16.vlgmr.msrb.gmra.mxu1 %v5186_v40  ;;  %v3480_v27 = vor.u32 %v4471_v16, %v3479_v15  ;;  %v3600_v35 = vor.u32 %v4501_v25, %v3599_v23  ;;  %v4396_v15 = vld [vmem:[#allocation4 + $0x54] sm:$0xf]  ;;  %v3185_v16 = vld [vmem:[#allocation4 + $0x58] sm:$0xf0]  ;;  %v3260_v21 = vor.u32 %v4414_v11, %v3257_v12  ;;  %v3241_v39 = vld [vmem:[#allocation4 + $0xc8] sm:$0xf0] }
  0x51   :  { %1170 = vmatpush.bf16.msra.mxu0 %v3448_v28  ;;  %v3471_v28 = vld [vmem:[#allocation4 + $0x290] sm:$0xf]  ;;  %v3188_v22 = vor.u32 %v4396_v15, %v3185_v16  ;;  %v4412_v23 = vld [vmem:[#allocation4 + $0xd4] sm:$0xf]  ;;  %v3249_v25 = vld [vmem:[#allocation4 + $0xd8] sm:$0xf0]  ;;  %v3244_v49 = vor.u32 %v4410_v38, %v3241_v39 }
  0x52   :  { %1196 = vmatpush.bf16.msra.mxu2 %v3576_v32  ;;  %v3399_v32 = vld [vmem:[#allocation4 + $0x200] sm:$0xf]  ;;  %v3472_v43 = vor.u32 %v4469_v30, %v3471_v28  ;;  %v3380_v28 = vor.u32 %v4444_v19, %v3377_v20  ;;  %v3177_v30 = vld [vmem:[#allocation4 + $0x48] sm:$0xf0]  ;;  %v3252_v36 = vor.u32 %v4412_v23, %v3249_v25  ;;  %v4438_v59 = vld [vmem:[#allocation4 + $0x1a4] sm:$0xf] }
  0x53   :  { %1209 = vmatpush.bf16.msra.mxu3 %v3640_v33  ;;  %1183 = vmatpush.bf16.msra.mxu1 %v3512_v41  ;;  %v4451_v33 = vld [vmem:[#allocation4 + $0x204] sm:$0xf0]  ;;  %v4400_v41 = vld [vmem:[#allocation4 + $0x74] sm:$0xf]  ;;  %v3353_v60 = vld [vmem:[#allocation4 + $0x1a8] sm:$0xf0] }
  0x54   :  { %v3400_v47 = vor.u32 %v4451_v33, %v3399_v32  ;;  %v4426_v32 = vld [vmem:[#allocation4 + $0x144] sm:$0xf]  ;;  %v3305_v33 = vld [vmem:[#allocation4 + $0x148] sm:$0xf0]  ;;  %v4436_v11 = vld [vmem:[#allocation4 + $0x194] sm:$0xf] }
  0x55   :  { %1171 = vmatpush.bf16.msra.mxu0 %v3440_v42  ;;  %v3201_v42 = vld [vmem:[#allocation4 + $0x78] sm:$0xf0]  ;;  %v4406_v63 = vld [vmem:[#allocation4 + $0xa4] sm:$0xf]  ;;  %v3225_v0 = vld [vmem:[#allocation4 + $0xa8] sm:$0xf0] }
  0x56   :  { %1197 = vmatpush.bf16.msra.mxu2 %v3568_v45  ;;  %v3329_v45 = vld [vmem:[#allocation4 + $0x178] sm:$0xf0]  ;;  %v3204_v56 = vor.u32 %v4400_v41, %v3201_v42  ;;  %v3308_v41 = vor.u32 %v4426_v32, %v3305_v33  ;;  %v4434_v23 = vld [vmem:[#allocation4 + $0x184] sm:$0xf]  ;;  %v3337_v25 = vld [vmem:[#allocation4 + $0x188] sm:$0xf0] }
  0x57   :  { %1210 = vmatpush.bf16.msra.mxu3 %v3632_v46  ;;  %1184 = vmatpush.bf16.msra.mxu1 %v3504_v53  ;;  %v4448_v46 = vld [vmem:[#allocation4 + $0x1f4] sm:$0xf]  ;;  %v89_v53 = vld [vmem:[%s5686_s4 + $0x20] sm:$0xff]  ;;  %v3345_v12 = vld [vmem:[#allocation4 + $0x198] sm:$0xf0]  ;;  %v3340_v39 = vor.u32 %v4434_v23, %v3337_v25 }
  0x58   :  { %v3396_v61 = vor.u32 %v4448_v46, %v3393_v48  ;;  %v3297_v46 = vld [vmem:[#allocation4 + $0x138] sm:$0xf0]  ;;  %v3348_v20 = vor.u32 %v4436_v11, %v3345_v12  ;;  %v4512_v33 = vld [vmem:[#allocation4 + $0x3f4] sm:$0xf]  ;;  %v3433_v11 = vld [vmem:[#allocation4 + $0x248] sm:$0xf0] }
  0x59   :  { %1172 = vmatpush.bf16.msra.mxu0 %v3432_v54  ;;  %v91_v54 = vld [vmem:[%s5686_s4 + $0x30] sm:$0xff]  ;;  %v3361_v48 = vld [vmem:[#allocation4 + $0x1b8] sm:$0xf0]  ;;  %v3561_v12 = vld [vmem:[#allocation4 + $0x348] sm:$0xf0] }
  0x5a   :  { %1198 = vmatpush.bf16.msra.mxu2 %v3560_v57  ;;  %v3332_v57 = vor.u32 %v4432_v44, %v3329_v45  ;;  %v5205_v3 = vpack.c.bf16 %v91_v54, %v91_v54  ;;  %v3169_v44 = vld [vmem:[#allocation4 + $0x38] sm:$0xf0]  ;;  %v4424_v45 = vld [vmem:[#allocation4 + $0x134] sm:$0xf]  ;;  %82 = dma.hbm_to_vmem [thread:$0]  %s78_s19, 16384, %s80_s20, [#allocation3] }
  0x5b   :  { %1211 = vmatpush.bf16.msra.mxu3 %v3624_v58  ;;  %1185 = vmatpush.bf16.msra.mxu1 %v3496_v1  ;;  %v3265_v58 = vld [vmem:[#allocation4 + $0xf8] sm:$0xf0]  ;;  %v4430_v1 = vld [vmem:[#allocation4 + $0x164] sm:$0xf]  ;;  %v4504_v23 = vld [vmem:[#allocation4 + $0x3b4] sm:$0xf] }
  0x5c   :  { %v3268_v7 = vor.u32 %v4416_v55, %v3265_v58  ;;  %v4390_v55 = vld [vmem:[#allocation4 + $0x24] sm:$0xf]  ;;  %v3289_v58 = vld [vmem:[#allocation4 + $0x128] sm:$0xf0]  ;;  %v3217_v16 = vld [vmem:[#allocation4 + $0x98] sm:$0xf0] }
  0x5d   :  { %1173 = vmatpush.bf16.msra.mxu0 %v3424_v2  ;;  %v5203_v2 = vpack.c.bf16 %v89_v53, %v89_v53  ;;  %v3300_v53 = vor.u32 %v4424_v45, %v3297_v46  ;;  %v3585_v32 = vld [vmem:[#allocation4 + $0x378] sm:$0xf0] }
  0x5e   :  { %1199 = vmatpush.bf16.msra.mxu2 %v3552_v5  ;;  %v4446_v5 = vld [vmem:[#allocation4 + $0x1e4] sm:$0xf]  ;;  %v3617_v25 = vld [vmem:[#allocation4 + $0x3b8] sm:$0xf0] }
  0x5f   :  { %1212 = vmatpush.bf16.msra.mxu3 %v3616_v6  ;;  %1186 = vmatpush.bf16.msra.mxu1 %v3488_v13  ;;  %v3385_v6 = vld [vmem:[#allocation4 + $0x1e8] sm:$0xf0]  ;;  %v3324_v13 = vor.u32 %v4430_v1, %v3321_v4  ;;  %v3356_v4 = vor.u32 %v4438_v59, %v3353_v60  ;;  %v4460_v59 = vld [vmem:[#allocation4 + $0x254] sm:$0xf]  ;;  %v3441_v60 = vld [vmem:[#allocation4 + $0x258] sm:$0xf0] }
  0x61   :  { %1174 = vmatpush.bf16.msra.mxu0 %v3416_v14  ;;  %v3388_v14 = vor.u32 %v4446_v5, %v3385_v6  ;;  %v4388_v5 = vld [vmem:[#allocation4 + $0x14] sm:$0xf]  ;;  %v3153_v6 = vld [vmem:[#allocation4 + $0x18] sm:$0xf0] }
  0x62   :  { %1200 = vmatpush.bf16.msra.mxu2 %v3544_v17  ;;  %v4428_v17 = vld [vmem:[#allocation4 + $0x154] sm:$0xf]  ;;  %v3156_v15 = vor.u32 %v4388_v5, %v3153_v6  ;;  %v3505_v6 = vld [vmem:[#allocation4 + $0x2d8] sm:$0xf0] }
  0x63   :  { %1213 = vmatpush.bf16.msra.mxu3 %v3608_v18  ;;  %1187 = vmatpush.bf16.msra.mxu1 %v3480_v27  ;;  %v3313_v18 = vld [vmem:[#allocation4 + $0x158] sm:$0xf0]  ;;  %v4476_v5 = vld [vmem:[#allocation4 + $0x2d4] sm:$0xf] }
  0x64   :  { %v3316_v27 = vor.u32 %v4428_v17, %v3313_v18  ;;  %v4386_v17 = vld [vmem:[#allocation4 + $0x4] sm:$0xf]  ;;  %v3145_v18 = vld [vmem:[#allocation4 + $0x8] sm:$0xf0] }
  0x65   :  { %1175 = vmatpush.bf16.msra.mxu0 %v3408_v29  ;;  %v4394_v29 = vld [vmem:[#allocation4 + $0x44] sm:$0xf] }
  0x66   :  { %1201 = vmatpush.bf16.msra.mxu2 %v3536_v34  ;;  %v4442_v34 = vld [vmem:[#allocation4 + $0x1c4] sm:$0xf]  ;;  %v3180_v37 = vor.u32 %v4394_v29, %v3177_v30  ;;  %v4496_v30 = vld [vmem:[#allocation4 + $0x374] sm:$0xf] }
  0x67   :  { %1214 = vmatpush.bf16.msra.mxu3 %v3600_v35  ;;  %1188 = vmatpush.bf16.msra.mxu1 %v3472_v43  ;;  %v3369_v35 = vld [vmem:[#allocation4 + $0x1c8] sm:$0xf0]  ;;  %v4392_v43 = vld [vmem:[#allocation4 + $0x34] sm:$0xf] }
  0x68   :  { %v3372_v42 = vor.u32 %v4442_v34, %v3369_v35  ;;  %v3172_v50 = vor.u32 %v4392_v43, %v3169_v44  ;;  %v3148_v34 = vor.u32 %v4386_v17, %v3145_v18  ;;  %v3649_v35 = vld [vmem:[#allocation4 + $0x3f8] sm:$0xf0]  ;;  %v4480_v43 = vld [vmem:[#allocation4 + $0x2f4] sm:$0xf] }
  0x69   :  { %1176 = vmatpush.bf16.msra.mxu0 %v3400_v47  ;;  %v4440_v47 = vld [vmem:[#allocation4 + $0x1b4] sm:$0xf]  ;;  %v3521_v44 = vld [vmem:[#allocation4 + $0x2f8] sm:$0xf0]  ;;  %v3652_v45 = vor.u32 %v4512_v33, %v3649_v35  ;;  %v3620_v33 = vor.u32 %v4504_v23, %v3617_v25  ;;  %v3417_v35 = vld [vmem:[#allocation4 + $0x228] sm:$0xf0] }
  0x6a   :  { %1202 = vmatpush.bf16.msra.mxu2 %v3528_v51  ;;  %v4408_v51 = vld [vmem:[#allocation4 + $0xb4] sm:$0xf]  ;;  %v3364_v54 = vor.u32 %v4440_v47, %v3361_v48  ;;  %v4462_v47 = vld [vmem:[#allocation4 + $0x264] sm:$0xf]  ;;  %v3449_v48 = vld [vmem:[#allocation4 + $0x268] sm:$0xf0] }
  0x6b   :  { %1215 = vmatpush.bf16.msra.mxu3 %v3592_v52  ;;  %1189 = vmatpush.bf16.msra.mxu1 %v3464_v62  ;;  %v3233_v52 = vld [vmem:[#allocation4 + $0xb8] sm:$0xf0] }
  0x6c   :  { %1177 = vmatmul.bf16.vlgmr.msra.gmra.mxu0 %v5203_v2 }
  0x6d   :  { %1221 = vmatpush.bf16.msrb.mxu0 %v3204_v56  ;;  %1203 = vmatmul.bf16.vlgmr.msra.gmra.mxu2 %v5205_v3  ;;  %v3161_v56 = vld [vmem:[#allocation4 + $0x28] sm:$0xf0] }
  0x6e   :  { %1247 = vmatpush.bf16.msrb.mxu2 %v3332_v57  ;;  %1216 = vmatmul.bf16.vlgmr.msra.gmra.mxu3 %v5207_v8  ;;  %v4422_v57 = vld [vmem:[#allocation4 + $0x124] sm:$0xf]  ;;  %v3164_v62 = vor.u32 %v4390_v55, %v3161_v56  ;;  %v3513_v56 = vld [vmem:[#allocation4 + $0x2e8] sm:$0xf0] }
  0x6f   :  { %1260 = vmatpush.bf16.msrb.mxu3 %v3396_v61  ;;  %1234 = vmatpush.bf16.msrb.mxu1 %v3268_v7  ;;  %v3236_v61 = vor.u32 %v4408_v51, %v3233_v52  ;;  %v3292_v1 = vor.u32 %v4422_v57, %v3289_v58  ;;  %v4420_v7 = vld [vmem:[#allocation4 + $0x114] sm:$0xf]  ;;  %v4510_v51 = vld [vmem:[#allocation4 + $0x3e4] sm:$0xf]  ;;  %v3641_v52 = vld [vmem:[#allocation4 + $0x3e8] sm:$0xf0] }
  0x70   :  { %1190 = vmatmul.bf16.vlgmr.msra.gmra.mxu1 %v5209_v9  ;;  %v4478_v55 = vld [vmem:[#allocation4 + $0x2e4] sm:$0xf]  ;;  %v3644_v58 = vor.u32 %v4510_v51, %v3641_v52  ;;  %v4500_v51 = vld [vmem:[#allocation4 + $0x394] sm:$0xf]  ;;  %v3601_v52 = vld [vmem:[#allocation4 + $0x398] sm:$0xf0] }
  0x71   :  { %1222 = vmatpush.bf16.msrb.mxu0 %v3196_v10  ;;  %v3281_v10 = vld [vmem:[#allocation4 + $0x118] sm:$0xf0] }
  0x72   :  { %1248 = vmatpush.bf16.msrb.mxu2 %v3324_v13  ;;  %v3228_v13 = vor.u32 %v4406_v63, %v3225_v0  ;;  %v3284_v19 = vor.u32 %v4420_v7, %v3281_v10  ;;  %v4508_v63 = vld [vmem:[#allocation4 + $0x3d4] sm:$0xf]  ;;  %v3633_v0 = vld [vmem:[#allocation4 + $0x3d8] sm:$0xf0] }
  0x73   :  { %1261 = vmatpush.bf16.msrb.mxu3 %v3388_v14  ;;  %1235 = vmatpush.bf16.msrb.mxu1 %v3260_v21  ;;  %v4404_v14 = vld [vmem:[#allocation4 + $0x94] sm:$0xf]  ;;  %v4418_v21 = vld [vmem:[#allocation4 + $0x104] sm:$0xf]  ;;  %v3636_v10 = vor.u32 %v4508_v63, %v3633_v0  ;;  %v3593_v0 = vld [vmem:[#allocation4 + $0x388] sm:$0xf0] }
  0x74   :  { %v3220_v29 = vor.u32 %v4404_v14, %v3217_v16  ;;  %v3625_v14 = vld [vmem:[#allocation4 + $0x3c8] sm:$0xf0]  ;;  %v4474_v16 = vld [vmem:[#allocation4 + $0x2c4] sm:$0xf] }
  0x75   :  { %1223 = vmatpush.bf16.msrb.mxu0 %v3188_v22  ;;  %v3273_v22 = vld [vmem:[#allocation4 + $0x108] sm:$0xf0]  ;;  %v4498_v63 = vld [vmem:[#allocation4 + $0x384] sm:$0xf] }
  0x76   :  { %1249 = vmatpush.bf16.msrb.mxu2 %v3316_v27  ;;  %v4464_v27 = vld [vmem:[#allocation4 + $0x274] sm:$0xf]  ;;  %v3276_v38 = vor.u32 %v4418_v21, %v3273_v22  ;;  %v3553_v22 = vld [vmem:[#allocation4 + $0x338] sm:$0xf0] }
  0x77   :  { %1262 = vmatpush.bf16.msrb.mxu3 %v3380_v28  ;;  %1236 = vmatpush.bf16.msrb.mxu1 %v3252_v36  ;;  %v3457_v28 = vld [vmem:[#allocation4 + $0x278] sm:$0xf0]  ;;  %v4402_v36 = vld [vmem:[#allocation4 + $0x84] sm:$0xf]  ;;  %v4488_v21 = vld [vmem:[#allocation4 + $0x334] sm:$0xf] }
  0x79   :  { %1224 = vmatpush.bf16.msrb.mxu0 %v3180_v37  ;;  %v3209_v37 = vld [vmem:[#allocation4 + $0x88] sm:$0xf0] }
  0x7a   :  { %1250 = vmatpush.bf16.msrb.mxu2 %v3308_v41  ;;  %v3460_v41 = vor.u32 %v4464_v27, %v3457_v28  ;;  %v3212_v46 = vor.u32 %v4402_v36, %v3209_v37  ;;  %v4486_v36 = vld [vmem:[#allocation4 + $0x324] sm:$0xf]  ;;  %v3545_v37 = vld [vmem:[#allocation4 + $0x328] sm:$0xf0] }
  0x7b   :  { %1263 = vmatpush.bf16.msrb.mxu3 %v3372_v42  ;;  %1237 = vmatpush.bf16.msrb.mxu1 %v3244_v49  ;;  %v3588_v42 = vor.u32 %v4496_v30, %v3585_v32  ;;  %v4494_v49 = vld [vmem:[#allocation4 + $0x364] sm:$0xf]  ;;  %v3489_v30 = vld [vmem:[#allocation4 + $0x2b8] sm:$0xf0]  ;;  %v3556_v32 = vor.u32 %v4488_v21, %v3553_v22 }
  0x7d   :  { %1225 = vmatpush.bf16.msrb.mxu0 %v3172_v50  ;;  %v3577_v50 = vld [vmem:[#allocation4 + $0x368] sm:$0xf0] }
  0x7e   :  { %1251 = vmatpush.bf16.msrb.mxu2 %v3300_v53  ;;  %v3524_v53 = vor.u32 %v4480_v43, %v3521_v44  ;;  %v3580_v57 = vor.u32 %v4494_v49, %v3577_v50  ;;  %v4470_v43 = vld [vmem:[#allocation4 + $0x2a4] sm:$0xf]  ;;  %v3481_v44 = vld [vmem:[#allocation4 + $0x2a8] sm:$0xf0]  ;;  %v4484_v49 = vld [vmem:[#allocation4 + $0x314] sm:$0xf] }
  0x7f   :  { %1264 = vmatpush.bf16.msrb.mxu3 %v3364_v54  ;;  %1238 = vmatpush.bf16.msrb.mxu1 %v3236_v61  ;;  %v3452_v54 = vor.u32 %v4462_v47, %v3449_v48  ;;  %v4492_v61 = vld [vmem:[#allocation4 + $0x354] sm:$0xf]  ;;  %v3409_v48 = vld [vmem:[#allocation4 + $0x218] sm:$0xf0] }
  0x80   :  { %v4452_v47 = vld [vmem:[#allocation4 + $0x214] sm:$0xf]  ;;  %v3537_v50 = vld [vmem:[#allocation4 + $0x318] sm:$0xf0] }
  0x81   :  { %1226 = vmatpush.bf16.msrb.mxu0 %v3164_v62  ;;  %v3569_v62 = vld [vmem:[#allocation4 + $0x358] sm:$0xf0] }
  0x82   :  { %1252 = vmatpush.bf16.msrb.mxu2 %v3292_v1  ;;  %v3516_v1 = vor.u32 %v4478_v55, %v3513_v56  ;;  %v3572_v7 = vor.u32 %v4492_v61, %v3569_v62  ;;  %v4468_v55 = vld [vmem:[#allocation4 + $0x294] sm:$0xf]  ;;  %v3473_v56 = vld [vmem:[#allocation4 + $0x298] sm:$0xf0]  ;;  %v4482_v61 = vld [vmem:[#allocation4 + $0x304] sm:$0xf] }
  0x83   :  { %1265 = vmatpush.bf16.msrb.mxu3 %v3356_v4  ;;  %1239 = vmatpush.bf16.msrb.mxu1 %v3228_v13  ;;  %v3444_v4 = vor.u32 %v4460_v59, %v3441_v60  ;;  %v4506_v13 = vld [vmem:[#allocation4 + $0x3c4] sm:$0xf]  ;;  %v3604_v59 = vor.u32 %v4500_v51, %v3601_v52  ;;  %v3401_v60 = vld [vmem:[#allocation4 + $0x208] sm:$0xf0]  ;;  %v4563_v51 = vld [vmem:[%s5671_s8 + $0x74] sm:$0xf0] }
  0x84   :  { %v3628_v18 = vor.u32 %v4506_v13, %v3625_v14  ;;  %v3529_v62 = vld [vmem:[#allocation4 + $0x308] sm:$0xf0]  ;;  %v3785_v52 = vld [vmem:[%s5671_s8 + $0xf0] sm:$0xf] }
  0x85   :  { %1227 = vmatpush.bf16.msrb.mxu0 %v3156_v15  ;;  %v3508_v15 = vor.u32 %v4476_v5, %v3505_v6  ;;  %v4547_v5 = vld [vmem:[%s5669_s6 + $0x4] sm:$0xf0]  ;;  %v4546_v6 = vld [vmem:[%s5669_s6 + $0x4] sm:$0xf] }
  0x86   :  { %1253 = vmatpush.bf16.msrb.mxu2 %v3284_v19  ;;  %v4456_v19 = vld [vmem:[#allocation4 + $0x234] sm:$0xf] }
  0x87   :  { %1266 = vmatpush.bf16.msrb.mxu3 %v3348_v20  ;;  %1240 = vmatpush.bf16.msrb.mxu1 %v3220_v29  ;;  %v3425_v20 = vld [vmem:[#allocation4 + $0x238] sm:$0xf0]  ;;  %v4472_v29 = vld [vmem:[#allocation4 + $0x2b4] sm:$0xf] }
  0x88   :  { %v3428_v28 = vor.u32 %v4456_v19, %v3425_v20 }
  0x89   :  { %1228 = vmatpush.bf16.msrb.mxu0 %v3148_v34  ;;  %v4454_v34 = vld [vmem:[#allocation4 + $0x224] sm:$0xf] }
  0x8a   :  { %1254 = vmatpush.bf16.msrb.mxu2 %v3276_v38  ;;  %v4502_v38 = vld [vmem:[#allocation4 + $0x3a4] sm:$0xf] }
  0x8b   :  { %1267 = vmatpush.bf16.msrb.mxu3 %v3340_v39  ;;  %1241 = vmatpush.bf16.msrb.mxu1 %v3212_v46  ;;  %v3609_v39 = vld [vmem:[#allocation4 + $0x3a8] sm:$0xf0] }
  0x8c   :  { %1229 = vmatmul.bf16.vlgmr.msrb.gmra.mxu0 %v5176_v24  ;;  %v4458_v24 = vld [vmem:[#allocation4 + $0x244] sm:$0xf]  ;;  %v3612_v46 = vor.u32 %v4502_v38, %v3609_v39 }
  0x8d   :  { %1273 = vmatpush.bf16.msra.mxu0 %v3460_v41  ;;  %1255 = vmatmul.bf16.vlgmr.msrb.gmra.mxu2 %v5178_v26  ;;  %v4490_v26 = vld [vmem:[#allocation4 + $0x344] sm:$0xf]  ;;  %v3492_v41 = vor.u32 %v4472_v29, %v3489_v30 }
  0x8e   :  { %1299 = vmatpush.bf16.msra.mxu2 %v3588_v42  ;;  %1268 = vmatmul.bf16.vlgmr.msrb.gmra.mxu3 %v5183_v31  ;;  %v3436_v31 = vor.u32 %v4458_v24, %v3433_v11  ;;  %v3564_v17 = vor.u32 %v4490_v26, %v3561_v12  ;;  %v3420_v42 = vor.u32 %v4454_v34, %v3417_v35  ;;  %v4466_v24 = vld [vmem:[#allocation4 + $0x284] sm:$0xf]  ;;  %v3465_v11 = vld [vmem:[#allocation4 + $0x288] sm:$0xf0] }
  0x8f   :  { %1312 = vmatpush.bf16.msra.mxu3 %v3652_v45  ;;  %1286 = vmatpush.bf16.msra.mxu1 %v3524_v53  ;;  %v3548_v45 = vor.u32 %v4486_v36, %v3545_v37  ;;  %v3484_v53 = vor.u32 %v4470_v43, %v3481_v44  ;;  %v3532_v26 = vor.u32 %v4482_v61, %v3529_v62  ;;  %v3713_v62 = vld [vmem:[%s5671_s8 + $0x60] sm:$0xf] }
  0x90   :  { %1242 = vmatmul.bf16.vlgmr.msrb.gmra.mxu1 %v5186_v40  ;;  %v3497_v40 = vld [vmem:[#allocation4 + $0x2c8] sm:$0xf0]  ;;  %v3596_v12 = vor.u32 %v4498_v63, %v3593_v0  ;;  %v4561_v63 = vld [vmem:[%s5671_s8 + $0x64] sm:$0xf0]  ;;  %v3777_v0 = vld [vmem:[%s5671_s8 + $0xe0] sm:$0xf] }
  0x91   :  { %1274 = vmatpush.bf16.msra.mxu0 %v3452_v54  ;;  %v3500_v27 = vor.u32 %v4474_v16, %v3497_v40  ;;  %v3412_v54 = vor.u32 %v4452_v47, %v3409_v48 }
  0x92   :  { %1300 = vmatpush.bf16.msra.mxu2 %v3580_v57  ;;  %v4450_v57 = vld [vmem:[#allocation4 + $0x204] sm:$0xf] }
  0x93   :  { %1313 = vmatpush.bf16.msra.mxu3 %v3644_v58  ;;  %1287 = vmatpush.bf16.msra.mxu1 %v3516_v1  ;;  %v3540_v58 = vor.u32 %v4484_v49, %v3537_v50  ;;  %v3655_v1 = vld [vmem:[%s5669_s6] sm:$0xf]  ;;  %v3721_v50 = vld [vmem:[%s5671_s8 + $0x70] sm:$0xf] }
  0x94   :  { %v3656_v13 = vor.u32 %v4547_v5, %v3655_v1  ;;  %v4577_v5 = vld [vmem:[%s5671_s8 + $0xe4] sm:$0xf0] }
  0x95   :  { %1275 = vmatpush.bf16.msra.mxu0 %v3444_v4  ;;  %v3476_v4 = vor.u32 %v4468_v55, %v3473_v56  ;;  %v4562_v55 = vld [vmem:[%s5671_s8 + $0x74] sm:$0xf]  ;;  %v3723_v56 = vld [vmem:[%s5671_s8 + $0x78] sm:$0xf0] }
  0x96   :  { %1301 = vmatpush.bf16.msra.mxu2 %v3572_v7  ;;  %v3657_v7 = vld [vmem:[%s5669_s6 + $0x8] sm:$0xf0] }
  0x97   :  { %1314 = vmatpush.bf16.msra.mxu3 %v3636_v10  ;;  %1288 = vmatpush.bf16.msra.mxu1 %v3508_v15  ;;  %v3404_v10 = vor.u32 %v4450_v57, %v3401_v60  ;;  %v3660_v14 = vor.u32 %v4546_v6, %v3657_v7  ;;  %v3468_v15 = vor.u32 %v4466_v24, %v3465_v11  ;;  %v3787_v60 = vld [vmem:[%s5671_s8 + $0xf8] sm:$0xf0]  ;;  %v4560_v6 = vld [vmem:[%s5671_s8 + $0x64] sm:$0xf]  ;;  %v3715_v7 = vld [vmem:[%s5671_s8 + $0x68] sm:$0xf0] }
  0x98   :  { %v3718_v24 = vor.u32 %v4560_v6, %v3715_v7  ;;  %v4576_v11 = vld [vmem:[%s5671_s8 + $0xe4] sm:$0xf]  ;;  %v3747_v6 = vld [vmem:[%s5671_s8 + $0xa8] sm:$0xf0] }
  0x99   :  { %1276 = vmatpush.bf16.msra.mxu0 %v3436_v31  ;;  %v83_v31 = vld [vmem:[%s5665_s2] sm:$0xff] }
  0x9a   :  { %1302 = vmatpush.bf16.msra.mxu2 %v3564_v17  ;;  %v5238_v40 = vpack.c.bf16 %v83_v31, %v83_v31  ;;  %v3769_v31 = vld [vmem:[%s5671_s8 + $0xd0] sm:$0xf] }
  0x9b   :  { %1315 = vmatpush.bf16.msra.mxu3 %v3628_v18  ;;  %1289 = vmatpush.bf16.msra.mxu1 %v3500_v27 }
  0x9d   :  { %1277 = vmatpush.bf16.msra.mxu0 %v3428_v28 }
  0x9e   :  { %1303 = vmatpush.bf16.msra.mxu2 %v3556_v32 }
  0x9f   :  { %1316 = vmatpush.bf16.msra.mxu3 %v3620_v33  ;;  %1290 = vmatpush.bf16.msra.mxu1 %v3492_v41 }
  0xa1   :  { %1278 = vmatpush.bf16.msra.mxu0 %v3420_v42 }
  0xa2   :  { %1304 = vmatpush.bf16.msra.mxu2 %v3548_v45 }
  0xa3   :  { %1317 = vmatpush.bf16.msra.mxu3 %v3612_v46  ;;  %1291 = vmatpush.bf16.msra.mxu1 %v3484_v53  ;;  %v3722_v53 = vor.u32 %v4563_v51, %v3721_v50 }
  0xa5   :  { %1279 = vmatpush.bf16.msra.mxu0 %v3412_v54  ;;  %v4579_v54 = vld [vmem:[%s5671_s8 + $0xf4] sm:$0xf0] }
  0xa6   :  { %1305 = vmatpush.bf16.msra.mxu2 %v3540_v58  ;;  %v3786_v57 = vor.u32 %v4579_v54, %v3785_v52  ;;  %v3726_v58 = vor.u32 %v4562_v55, %v3723_v56  ;;  %v4570_v52 = vld [vmem:[%s5671_s8 + $0xb4] sm:$0xf]  ;;  %v3681_v54 = vld [vmem:[%s5671_s8 + $0x20] sm:$0xf] }
  0xa7   :  { %1318 = vmatpush.bf16.msra.mxu3 %v3604_v59  ;;  %1292 = vmatpush.bf16.msra.mxu1 %v3476_v4  ;;  %v4578_v59 = vld [vmem:[%s5671_s8 + $0xf4] sm:$0xf]  ;;  %v3714_v4 = vor.u32 %v4561_v63, %v3713_v62  ;;  %v4552_v63 = vld [vmem:[%s5671_s8 + $0x24] sm:$0xf] }
  0xa8   :  { %v3790_v61 = vor.u32 %v4578_v59, %v3787_v60  ;;  %v4569_v59 = vld [vmem:[%s5671_s8 + $0xa4] sm:$0xf0] }
  0xa9   :  { %1280 = vmatpush.bf16.msra.mxu0 %v3404_v10  ;;  %v3778_v10 = vor.u32 %v4577_v5, %v3777_v0  ;;  %v3683_v0 = vld [vmem:[%s5671_s8 + $0x28] sm:$0xf0] }
  0xaa   :  { %1306 = vmatpush.bf16.msra.mxu2 %v3532_v26  ;;  %v3779_v26 = vld [vmem:[%s5671_s8 + $0xe8] sm:$0xf0]  ;;  %v3686_v5 = vor.u32 %v4552_v63, %v3683_v0 }
  0xab   :  { %1319 = vmatpush.bf16.msra.mxu3 %v3596_v12  ;;  %1293 = vmatpush.bf16.msra.mxu1 %v3468_v15  ;;  %v4559_v15 = vld [vmem:[%s5671_s8 + $0x54] sm:$0xf0] }
  0xac   :  { %1281 = vmatmul.bf16.vlgmr.msra.gmra.mxu0 %v5203_v2 }
  0xad   :  { %1307 = vmatmul.bf16.vlgmr.msra.gmra.mxu2 %v5205_v3  ;;  %1606 = vmatpush.bf16.msrb.mxu0 %v3726_v58  ;;  %v3745_v58 = vld [vmem:[%s5671_s8 + $0xa0] sm:$0xf] }
  0xae   :  { %1349 = vmatpush.bf16.msrb.mxu2 %v3656_v13  ;;  %1320 = vmatmul.bf16.vlgmr.msra.gmra.mxu3 %v5207_v8  ;;  %v447_v17 = vpop.f32.mrf.mxu1  ;;  %v3782_v13 = vor.u32 %v4576_v11, %v3779_v26  ;;  %v3746_v62 = vor.u32 %v4569_v59, %v3745_v58  ;;  %v3737_v11 = vld [vmem:[%s5671_s8 + $0x90] sm:$0xf] }
  0xaf   :  { %1362 = vmatpush.bf16.msrb.mxu3 %v3660_v14  ;;  %1294 = vmatmul.bf16.vlgmr.msra.gmra.mxu1 %v5209_v9  ;;  %v434_v16 = vpop.f32.mrf.mxu0  ;;  %v3705_v14 = vld [vmem:[%s5671_s8 + $0x50] sm:$0xf] }
  0xb0   :  { %v448_v18 = vadd.f32 %v447_v17, %v434_v16  ;;  %1619 = vmatpush.bf16.msrb.mxu1 %v3790_v61  ;;  %v3706_v16 = vor.u32 %v4559_v15, %v3705_v14  ;;  %v4575_v17 = vld [vmem:[%s5671_s8 + $0xd4] sm:$0xf0]  ;;  %v4550_v14 = vld [vmem:[%s5671_s8 + $0x14] sm:$0xf] }
  0xb1   :  { %1607 = vmatpush.bf16.msrb.mxu0 %v3718_v24  ;;  %v4551_v24 = vld [vmem:[%s5671_s8 + $0x14] sm:$0xf0] }
  0xb2   :  { %1580 = vmatpush.bf16.msra.mxu2 %v3722_v53  ;;  %v3755_v53 = vld [vmem:[%s5671_s8 + $0xb8] sm:$0xf0] }
  0xb3   :  { %v460_v2 = vpop.f32.mrf.mxu2  ;;  %v473_v3 = vpop.f32.mrf.mxu3  ;;  %1593 = vmatpush.bf16.msra.mxu3 %v3786_v57  ;;  %v3758_v56 = vor.u32 %v4570_v52, %v3755_v53  ;;  %v4553_v57 = vld [vmem:[%s5671_s8 + $0x24] sm:$0xf0]  ;;  %v4590_v53 = vld [vmem:[%s5673_s10 + $0x54] sm:$0xf] }
  0xb4   :  { %v5244_v8 = vadd.f32 %v473_v3, %v460_v2  ;;  %1620 = vmatpush.bf16.msrb.mxu1 %v3782_v13  ;;  %v3707_v2 = vld [vmem:[%s5671_s8 + $0x58] sm:$0xf0]  ;;  %v3770_v3 = vor.u32 %v4575_v17, %v3769_v31  ;;  %v3682_v61 = vor.u32 %v4553_v57, %v3681_v54  ;;  %v4567_v13 = vld [vmem:[%s5671_s8 + $0x94] sm:$0xf0] }
  0xb5   :  { %v3738_v15 = vor.u32 %v4567_v13, %v3737_v11  ;;  %v3675_v31 = vld [vmem:[%s5671_s8 + $0x18] sm:$0xf0] }
  0xb6   :  { %v449_v19 = vpop.f32.mrf.mxu1  ;;  %1581 = vmatpush.bf16.msra.mxu2 %v3714_v4  ;;  %v4568_v4 = vld [vmem:[%s5671_s8 + $0xa4] sm:$0xf]  ;;  %v3678_v17 = vor.u32 %v4550_v14, %v3675_v31 }
  0xb7   :  { %v436_v9 = vpop.f32.mrf.mxu0  ;;  %1594 = vmatpush.bf16.msra.mxu3 %v3778_v10  ;;  %v4574_v19 = vld [vmem:[%s5671_s8 + $0xd4] sm:$0xf]  ;;  %v3750_v7 = vor.u32 %v4568_v4, %v3747_v6  ;;  %v3673_v10 = vld [vmem:[%s5671_s8 + $0x10] sm:$0xf]  ;;  %v1370_v4 = vld [vmem:[%s5670_s7] sm:$0x3] }
  0xb8   :  { %v3674_v26 = vor.u32 %v4551_v24, %v3673_v10  ;;  %v1372_v6 = vperm.slane %v1370_v4, 0 }
  0xba   :  { %1582 = vmatpush.bf16.msra.mxu2 %v3706_v16  ;;  %v4566_v16 = vld [vmem:[%s5671_s8 + $0x94] sm:$0xf] }
  0xbb   :  { %v462_v20 = vpop.f32.mrf.mxu2  ;;  %v475_v21 = vpop.f32.mrf.mxu3  ;;  %1595 = vmatpush.bf16.msra.mxu3 %v3770_v3  ;;  %v3665_v3 = vld [vmem:[%s5671_s8] sm:$0xf] }
  0xbc   :  { %v3771_v20 = vld [vmem:[%s5671_s8 + $0xd8] sm:$0xf0] }
  0xbd   :  { %3661 = vmatmul.msk.bf16.vlgmr.msrb.gmra.mxu2 %vm1338_vm0, %v5238_v40 }
  0xbe   :  { %3662 = vmatmul.msk.bf16.vlgmr.msrb.gmra.mxu3 %vm1338_vm0, %v5238_v40 }
  0xc9   :  { %v1126_v22 = vpop.f32.mrf.mxu0 }
  0xca   :  { %v1127_v23 = vadd.f32 %v1126_v22, %v448_v18  ;;  %v4558_v18 = vld [vmem:[%s5671_s8 + $0x54] sm:$0xf]  ;;  %v3774_v22 = vor.u32 %v4574_v19, %v3771_v20  ;;  %v3729_v19 = vld [vmem:[%s5671_s8 + $0x80] sm:$0xf] }
  0xcb   :  { %v3710_v9 = vor.u32 %v4558_v18, %v3707_v2  ;;  %v3739_v18 = vld [vmem:[%s5671_s8 + $0x98] sm:$0xf0] }
  0xcc   :  { %1621 = vmatpush.bf16.msrb.mxu1 %v3774_v22  ;;  %v3742_v2 = vor.u32 %v4566_v16, %v3739_v18  ;;  %v4565_v22 = vld [vmem:[%s5671_s8 + $0x84] sm:$0xf0] }
  0xcd   :  { %v1139_v25 = vpop.f32.mrf.mxu1  ;;  %1608 = vmatpush.bf16.msrb.mxu0 %v3710_v9  ;;  %v4549_v9 = vld [vmem:[%s5671_s8 + $0x4] sm:$0xf0] }
  0xce   :  { %v1140_v27 = vadd.f32 %v1139_v25, %v1127_v23  ;;  %v3697_v25 = vld [vmem:[%s5671_s8 + $0x40] sm:$0xf]  ;;  %v3666_v20 = vor.u32 %v4549_v9, %v3665_v3  ;;  %v4588_v3 = vld [vmem:[%s5673_s10 + $0x44] sm:$0xf] }
  0xd0   :  { %v1152_v28 = vpop.f32.mrf.mxu2 }
  0xd1   :  { %v1153_v29 = vadd.f32 %v1152_v28, %v1140_v27  ;;  %v1128_v30 = vpop.f32.mrf.mxu0  ;;  %v1165_v32 = vpop.f32.mrf.mxu3  ;;  %v4557_v27 = vld [vmem:[%s5671_s8 + $0x44] sm:$0xf0]  ;;  %v3761_v28 = vld [vmem:[%s5671_s8 + $0xc0] sm:$0xf] }
  0xd2   :  { %v3698_v30 = vor.u32 %v4557_v27, %v3697_v25  ;;  %v4548_v25 = vld [vmem:[%s5671_s8 + $0x4] sm:$0xf]  ;;  %v3667_v27 = vld [vmem:[%s5671_s8 + $0x8] sm:$0xf0] }
  0xd3   :  { %v1166_v33 = vadd.f32 %v1165_v32, %v1153_v29  ;;  %v4573_v32 = vld [vmem:[%s5671_s8 + $0xc4] sm:$0xf0] }
  0xd4   :  { %1583 = vmatpush.bf16.msra.mxu2 %v3698_v30  ;;  %v4564_v30 = vld [vmem:[%s5671_s8 + $0x84] sm:$0xf] }
  0xd5   :  { %v1141_v34 = vpop.f32.mrf.mxu1 }
  0xd6   :  { %v3699_v34 = vld [vmem:[%s5671_s8 + $0x48] sm:$0xf0] }
  0xd8   :  { %v1154_v35 = vpop.f32.mrf.mxu2 }
  0xd9   :  { %v1167_v36 = vpop.f32.mrf.mxu3  ;;  %v3762_v35 = vor.u32 %v4573_v32, %v3761_v28  ;;  %v3730_v28 = vor.u32 %v4565_v22, %v3729_v19  ;;  %v3731_v32 = vld [vmem:[%s5671_s8 + $0x88] sm:$0xf0]  ;;  %v4597_v22 = vld [vmem:[%s5674_s11 + $0x4] sm:$0xf0] }
  0xda   :  { %v3837_v19 = vld [vmem:[%s5673_s10 + $0x48] sm:$0xf0] }
  0xdb   :  { %1596 = vmatpush.bf16.msra.mxu3 %v3762_v35 }
  0xe9   :  { %v1178_v37 = vpop.f32.mrf.mxu0 }
  0xea   :  { %v1179_v38 = vadd.f32 %v1178_v37, %v1166_v33  ;;  %v4556_v33 = vld [vmem:[%s5671_s8 + $0x44] sm:$0xf] }
  0xeb   :  { %v3702_v36 = vor.u32 %v4556_v33, %v3699_v34  ;;  %v4572_v37 = vld [vmem:[%s5671_s8 + $0xc4] sm:$0xf]  ;;  %v3734_v33 = vor.u32 %v4564_v30, %v3731_v32  ;;  %v3827_v32 = vld [vmem:[%s5673_s10 + $0x30] sm:$0xf] }
  0xed   :  { %v1191_v39 = vpop.f32.mrf.mxu1  ;;  %1609 = vmatpush.bf16.msrb.mxu0 %v3702_v36  ;;  %v3859_v36 = vld [vmem:[%s5673_s10 + $0x70] sm:$0xf] }
  0xee   :  { %v1192_v41 = vadd.f32 %v1191_v39, %v1179_v38  ;;  %v3763_v38 = vld [vmem:[%s5671_s8 + $0xc8] sm:$0xf0] }
  0xf0   :  { %v1204_v42 = vpop.f32.mrf.mxu2 }
  0xf1   :  { %v1205_v43 = vadd.f32 %v1204_v42, %v1192_v41  ;;  %v1217_v44 = vpop.f32.mrf.mxu3  ;;  %v1180_v45 = vpop.f32.mrf.mxu0  ;;  %v3766_v41 = vor.u32 %v4572_v37, %v3763_v38  ;;  %v3689_v42 = vld [vmem:[%s5671_s8 + $0x30] sm:$0xf]  ;;  %v4595_v37 = vld [vmem:[%s5673_s10 + $0x74] sm:$0xf0]  ;;  %v4594_v38 = vld [vmem:[%s5673_s10 + $0x74] sm:$0xf] }
  0xf3   :  { %v5246_v46 = vadd.f32 %v1217_v44, %v1205_v43  ;;  %v4555_v43 = vld [vmem:[%s5671_s8 + $0x34] sm:$0xf0]  ;;  %v3753_v44 = vld [vmem:[%s5671_s8 + $0xb0] sm:$0xf]  ;;  %1622 = vmatpush.bf16.msrb.mxu1 %v3766_v41  ;;  %v3861_v41 = vld [vmem:[%s5673_s10 + $0x78] sm:$0xf0] }
  0xf4   :  { %v3690_v45 = vor.u32 %v4555_v43, %v3689_v42  ;;  %v3864_v43 = vor.u32 %v4594_v38, %v3861_v41  ;;  %v3819_v38 = vld [vmem:[%s5673_s10 + $0x20] sm:$0xf]  ;;  %v4584_v41 = vld [vmem:[%s5673_s10 + $0x24] sm:$0xf] }
  0xf5   :  { %v1193_v47 = vpop.f32.mrf.mxu1 }
  0xf6   :  { %v4571_v47 = vld [vmem:[%s5671_s8 + $0xb4] sm:$0xf0]  ;;  %1584 = vmatpush.bf16.msra.mxu2 %v3690_v45  ;;  %v3853_v45 = vld [vmem:[%s5673_s10 + $0x68] sm:$0xf0] }
  0xf7   :  { %v3754_v50 = vor.u32 %v4571_v47, %v3753_v44  ;;  %1623 = vmatpush.bf16.msrb.mxu1 %v3758_v56  ;;  %v4592_v44 = vld [vmem:[%s5673_s10 + $0x64] sm:$0xf] }
  0xf8   :  { %v1206_v48 = vpop.f32.mrf.mxu2 }
  0xf9   :  { %v1219_v49 = vpop.f32.mrf.mxu3  ;;  %v4554_v48 = vld [vmem:[%s5671_s8 + $0x34] sm:$0xf]  ;;  %1597 = vmatpush.bf16.msra.mxu3 %v3754_v50  ;;  %v3843_v50 = vld [vmem:[%s5673_s10 + $0x50] sm:$0xf] }
  0xfa   :  { %v3691_v49 = vld [vmem:[%s5671_s8 + $0x38] sm:$0xf0]  ;;  %1585 = vmatpush.bf16.msra.mxu2 %v3682_v61 }
  0xfb   :  { %v3694_v51 = vor.u32 %v4554_v48, %v3691_v49  ;;  %1624 = vmatpush.bf16.msrb.mxu1 %v3750_v7  ;;  %v3856_v49 = vor.u32 %v4592_v44, %v3853_v45  ;;  %v1373_v7 = vperm.slane %v1370_v4, 1  ;;  %v4583_v44 = vld [vmem:[%s5673_s10 + $0x14] sm:$0xf0] }
  0xfd   :  { %1610 = vmatpush.bf16.msrb.mxu0 %v3694_v51  ;;  %1598 = vmatpush.bf16.msra.mxu3 %v3746_v62  ;;  %v4591_v51 = vld [vmem:[%s5673_s10 + $0x54] sm:$0xf0] }
  0xfe   :  { %1586 = vmatpush.bf16.msra.mxu2 %v3674_v26  ;;  %v3844_v57 = vor.u32 %v4591_v51, %v3843_v50  ;;  %v4581_v50 = vld [vmem:[%s5673_s10 + $0x4] sm:$0xf0]  ;;  %v4580_v51 = vld [vmem:[%s5673_s10 + $0x4] sm:$0xf] }
  0xff   :  { %1625 = vmatpush.bf16.msrb.mxu1 %v3742_v2  ;;  %v3835_v2 = vld [vmem:[%s5673_s10 + $0x40] sm:$0xf] }
 0x101   :  { %1611 = vmatpush.bf16.msrb.mxu0 %v3686_v5  ;;  %1599 = vmatpush.bf16.msra.mxu3 %v3738_v15 }
 0x102   :  { %1587 = vmatpush.bf16.msra.mxu2 %v3666_v20  ;;  %v3793_v20 = vld [vmem:[%s5674_s11] sm:$0xf] }
 0x103   :  { %1626 = vmatpush.bf16.msrb.mxu1 %v3734_v33  ;;  %v4587_v33 = vld [vmem:[%s5673_s10 + $0x34] sm:$0xf0] }
 0x105   :  { %1612 = vmatpush.bf16.msrb.mxu0 %v3678_v17  ;;  %1600 = vmatpush.bf16.msra.mxu3 %v3730_v28  ;;  %v3794_v28 = vor.u32 %v4597_v22, %v3793_v20 }
 0x107   :  { %1785 = vmatpush.bf16.msra.mxu1 %v3864_v43  ;;  %1673 = vmatpush.bf16.msrb.mxu2 %v3794_v28  ;;  %v3811_v43 = vld [vmem:[%s5673_s10 + $0x10] sm:$0xf] }
 0x108   :  { %v3812_v45 = vor.u32 %v4583_v44, %v3811_v43 }
 0x109   :  { %v5281_v1 = vpop.f32.mrf.mxu0 }
 0x10a   :  { %v1231_v34 = vadd.f32 %v5281_v1, %v5244_v8  ;;  %v3851_v8 = vld [vmem:[%s5673_s10 + $0x60] sm:$0xf]  ;;  %v4593_v1 = vld [vmem:[%s5673_s10 + $0x64] sm:$0xf0] }
 0x10b   :  { %v3852_v48 = vor.u32 %v4593_v1, %v3851_v8  ;;  %1786 = vmatpush.bf16.msra.mxu1 %v3856_v49  ;;  %v3821_v1 = vld [vmem:[%s5673_s10 + $0x28] sm:$0xf0]  ;;  %v3803_v49 = vld [vmem:[%s5673_s10] sm:$0xf] }
 0x10d   :  { %v5298_v12 = vpop.f32.mrf.mxu1 }
 0x10e   :  { %v1244_v47 = vadd.f32 %v5298_v12, %v1231_v34  ;;  %v3845_v12 = vld [vmem:[%s5673_s10 + $0x58] sm:$0xf0]  ;;  %v4586_v34 = vld [vmem:[%s5673_s10 + $0x34] sm:$0xf] }
 0x10f   :  { %v3848_v58 = vor.u32 %v4590_v53, %v3845_v12  ;;  %v3805_v53 = vld [vmem:[%s5673_s10 + $0x8] sm:$0xf0] }
 0x110   :  { %v5324_v21 = vpop.f32.mrf.mxu2  ;;  %v3808_v12 = vor.u32 %v4580_v51, %v3805_v53 }
 0x111   :  { %v5326_v23 = vpop.f32.mrf.mxu3  ;;  %v1232_v29 = vpop.f32.mrf.mxu0  ;;  %v1257_v52 = vadd.f32 %v5324_v21, %v1244_v47  ;;  %1787 = vmatpush.bf16.msra.mxu1 %v3848_v58  ;;  %v3813_v47 = vld [vmem:[%s5673_s10 + $0x18] sm:$0xf0] }
 0x112   :  { %v3670_v29 = vor.u32 %v4548_v25, %v3667_v27  ;;  %v4596_v25 = vld [vmem:[%s5674_s11 + $0x4] sm:$0xf]  ;;  %v3840_v27 = vor.u32 %v4588_v3, %v3837_v19 }
 0x113   :  { %v1270_v59 = vadd.f32 %v5326_v23, %v1257_v52  ;;  %v3804_v52 = vor.u32 %v4581_v50, %v3803_v49 }
 0x114   :  { %1613 = vmatpush.bf16.msrb.mxu0 %v3670_v29  ;;  %v3795_v29 = vld [vmem:[%s5674_s11 + $0x8] sm:$0xf0] }
 0x115   :  { %v1245_v39 = vpop.f32.mrf.mxu1  ;;  %v3798_v30 = vor.u32 %v4596_v25, %v3795_v29  ;;  %1788 = vmatpush.bf16.msra.mxu1 %v3840_v27 }
 0x116   :  { %v3860_v39 = vor.u32 %v4595_v37, %v3859_v36  ;;  %v3829_v36 = vld [vmem:[%s5673_s10 + $0x38] sm:$0xf0] }
 0x117   :  { %1686 = vmatpush.bf16.msrb.mxu3 %v3798_v30  ;;  %v3832_v37 = vor.u32 %v4586_v34, %v3829_v36 }
 0x118   :  { %v1258_v55 = vpop.f32.mrf.mxu2  ;;  %1772 = vmatpush.bf16.msra.mxu0 %v3860_v39  ;;  %v4585_v39 = vld [vmem:[%s5673_s10 + $0x24] sm:$0xf0] }
 0x119   :  { %v1271_v60 = vpop.f32.mrf.mxu3  ;;  %1789 = vmatpush.bf16.msra.mxu1 %v3832_v37  ;;  %v3820_v8 = vor.u32 %v4585_v39, %v3819_v38 }
 0x11c   :  { %1773 = vmatpush.bf16.msra.mxu0 %v3852_v48 }
 0x120   :  { %1774 = vmatpush.bf16.msra.mxu0 %v3844_v57 }
 0x129   :  { %v1282_v35 = vpop.f32.mrf.mxu0 }
 0x12a   :  { %v1283_v61 = vadd.f32 %v1282_v35, %v1270_v59  ;;  %v3828_v35 = vor.u32 %v4587_v33, %v3827_v32 }
 0x12c   :  { %v1295_v42 = vpop.f32.mrf.mxu1 }
 0x12d   :  { %v1296_v63 = vadd.f32 %v1295_v42, %v1283_v61  ;;  %v3824_v42 = vor.u32 %v4584_v41, %v3821_v1 }
 0x12f   :  { %1790 = vmatpush.bf16.msra.mxu1 %v3824_v42 }
 0x130   :  { %v1308_v54 = vpop.f32.mrf.mxu2 }
 0x131   :  { %v1321_v55 = vpop.f32.mrf.mxu3  ;;  %v1284_v56 = vpop.f32.mrf.mxu0  ;;  %v1309_v0 = vadd.f32 %v1308_v54, %v1296_v63  ;;  %v1414_v54 = vld [vmem:[%s5672_s9] sm:$0x3] }
 0x132   :  { %v1416_v63 = vperm.slane %v1414_v54, 0 }
 0x133   :  { %v1322_v5 = vadd.f32 %v1321_v55, %v1309_v0  ;;  %v1417_v55 = vperm.slane %v1414_v54, 1 }
 0x134   :  { %v1297_v60 = vpop.f32.mrf.mxu1 }
 0x138   :  { %v1310_v21 = vpop.f32.mrf.mxu2 }
 0x139   :  { %v1323_v62 = vpop.f32.mrf.mxu3 }
 0x140   :  { %v1351_v10 = vpop.f32.mrf.mxu2 }
 0x141   :  { %v1364_v24 = vpop.f32.mrf.mxu3  ;;  %v1368_v11 = vadd.f32 %v1351_v10, %v5246_v46  ;;  %v4589_v46 = vld [vmem:[%s5673_s10 + $0x44] sm:$0xf0] }
 0x142   :  { %v1369_v23 = vadd.f32 %v1364_v24, %v1322_v5  ;;  %v3836_v9 = vor.u32 %v4589_v46, %v3835_v2 }
 0x143   :  { %v1376_v26 = vadd.f32 %v1372_v6, %v1368_v11  ;;  %v84_v6 = vld [vmem:[%s5666_s3] sm:$0xff] }
 0x144   :  { %v1377_v13 = vadd.f32 %v1373_v7, %v1369_v23  ;;  %1775 = vmatpush.bf16.msra.mxu0 %v3836_v9 }
 0x145   :  { %v1378_v14 = vmax.f32 %v1376_v26, 0.0 }
 0x146   :  { %v1379_v15 = vmax.f32 %v1377_v13, 0.0 }
 0x147   :  { %v1380_v31 = vpack.c.bf16 %v1378_v14, %v1378_v14 }
 0x148   :  { %v1381_v16 = vpack.c.bf16 %v1379_v15, %v1379_v15  ;;  %v1353_v17 = vpop.f32.mrf.mxu2  ;;  %1776 = vmatpush.bf16.msra.mxu0 %v3828_v35 }
 0x149   :  { %v1366_v18 = vpop.f32.mrf.mxu3  ;;  %1588 = vmatmul.bf16.vlgmr.msra.gmra.mxu2 %v1380_v31  ;;  %1614 = vmatmul.bf16.vlgmr.msrb.gmra.mxu0 %v1380_v31  ;;  %v1798_v17 = vld [vmem:[%s5675_s12] sm:$0x3] }
 0x14a   :  { %1601 = vmatmul.bf16.vlgmr.msra.gmra.mxu3 %v1381_v16  ;;  %1627 = vmatmul.bf16.vlgmr.msrb.gmra.mxu1 %v1381_v16  ;;  %v1800_v18 = vperm.slane %v1798_v17, 0  ;;  %v1801_v2 = vperm.slane %v1798_v17, 1 }
 0x14c   :  { %1777 = vmatpush.bf16.msra.mxu0 %v3820_v8 }
 0x150   :  { %1778 = vmatpush.bf16.msra.mxu0 %v3812_v45 }
 0x154   :  { %1779 = vmatpush.bf16.msra.mxu0 %v3804_v52 }
 0x159   :  { %3799 = vmatmul.msk.bf16.vlgmr.msrb.gmra.mxu2 %vm1338_vm0, %v5238_v40 }
 0x15a   :  { %3800 = vmatmul.msk.bf16.vlgmr.msrb.gmra.mxu3 %vm1338_vm0, %v5238_v40  ;;  %v4582_v40 = vld [vmem:[%s5673_s10 + $0x14] sm:$0xf] }
 0x15b   :  { %v3816_v48 = vor.u32 %v4582_v40, %v3813_v47 }
 0x15d   :  { %1791 = vmatpush.bf16.msra.mxu1 %v3816_v48 }
 0x161   :  { %1792 = vmatpush.bf16.msra.mxu1 %v3808_v12 }
 0x1c6   :  { %v1615_v56 = vpop.f32.mrf.mxu0 }
 0x1c7   :  { %v1628_v57 = vpop.f32.mrf.mxu1  ;;  %v1616_v58 = vadd.f32 %v1615_v56, %v1417_v55 }
 0x1c9   :  { %v1629_v59 = vadd.f32 %v1628_v57, %v1616_v58 }
 0x1cb   :  { %v1632_v60 = vmul.f32 0.5, %v1629_v59 }
 0x1cc   :  { %v1589_v61 = vpop.f32.mrf.mxu2 }
 0x1cd   :  { %v1602_v21 = vpop.f32.mrf.mxu3  ;;  %v1633_v62 = vmul.f32 1.442695, %v1632_v60  ;;  %v1590_v5 = vadd.f32 %v1589_v61, %v1416_v63 }
 0x1ce   :  { %v1617_v0 = vpop.f32.mrf.mxu0 }
 0x1cf   :  { %v1630_v4 = vpop.f32.mrf.mxu1  ;;  %4732 = vpow2.f32 %v1633_v62  ;;  %v1603_v11 = vadd.f32 %v1602_v21, %v1590_v5 }
 0x1d4   :  { %v1591_v7 = vpop.f32.mrf.mxu2 }
 0x1d5   :  { %v1604_v10 = vpop.f32.mrf.mxu3  ;;  %v4733_v24 = vpop.eup %4732 }
 0x1d6   :  { %v1635_v23 = vmul.f32 %v4733_v24, %v84_v6 }
 0x1d8   :  { %v1636_v26 = vadd.f32 %v1635_v23, %v1603_v11 }
 0x1da   :  { %v1637_v13 = vpack.c.bf16 %v1636_v26, %v1636_v26 }
 0x1dc   :  { %1780 = vmatmul.bf16.vlgmr.msra.gmra.mxu0 %v1637_v13  ;;  %1793 = vmatmul.bf16.vlgmr.msra.gmra.mxu1 %v1637_v13  ;;  %v1675_v14 = vpop.f32.mrf.mxu2 }
 0x1dd   :  { %v1688_v15 = vpop.f32.mrf.mxu3 }
 0x1e4   :  { %v1677_v31 = vpop.f32.mrf.mxu2 }
 0x1e5   :  { %v1690_v16 = vpop.f32.mrf.mxu3 }
 0x259   :  { %v1781_v46 = vpop.f32.mrf.mxu0  ;;  %v1794_v3 = vpop.f32.mrf.mxu1 }
 0x25a   :  { %v1782_v9 = vadd.f32 %v1781_v46, %v1675_v14  ;;  %v1795_v19 = vadd.f32 %v1794_v3, %v1688_v15 }
 0x25c   :  { %v5581_v20 = vadd.f32 %v1800_v18, %v1782_v9  ;;  %v5583_v22 = vadd.f32 %v1801_v2, %v1795_v19 }
 0x25e   :  { %v1806_v25 = vmax.f32 %v5581_v20, 0.0  ;;  %v1807_v27 = vmax.f32 %v5583_v22, 0.0 }
 0x261   :  { %v1783_v28 = vpop.f32.mrf.mxu0  ;;  %v1796_v29 = vpop.f32.mrf.mxu1 }
 0x262   :  { %4864 = dma.done.wait [#allocation3], 16384 }
 0x263   :  { %4865 = vsyncadd [#allocation3], 4294950912  ;;  %2968 = vst [vmem:[#allocation7] sm:$0xff] %v1603_v11  ;;  %v4091_v30 = vld [vmem:[#allocation2 + $0x1c0] sm:$0xf]  ;;  %s4874_s4 = smov [#allocation7]  }
 0x264   :  { %2969 = vst [vmem:[#allocation8] sm:$0xff] %v1629_v59  ;;  %v4658_v32 = vld [vmem:[#allocation2 + $0x1dc] sm:$0xf0]  ;;  %v4654_v36 = vld [vmem:[#allocation2 + $0x1c4] sm:$0xf]  ;;  %s2977_s22 = sshll.u32 %s4874_s4, 4  ;;  %s2978_s22 = int_to_ptr.vmem [resolvable:$true] %s2977_s22 }
 0x265   :  { %v4347_v33 = vld [vmem:[#allocation2 + $0x3c0] sm:$0xf]  ;;  %v4092_v34 = vor.u32 %v4658_v32, %v4091_v30  ;;  %v4093_v37 = vld [vmem:[#allocation2 + $0x1e0] sm:$0xf0]  ;;  %v4035_v20 = vld [vmem:[#allocation2 + $0x148] sm:$0xf] }
 0x266   :  { %v4722_v35 = vld [vmem:[#allocation2 + $0x3dc] sm:$0xf0]  ;;  %v4096_v39 = vor.u32 %v4654_v36, %v4093_v37  ;;  %v4718_v41 = vld [vmem:[#allocation2 + $0x3c4] sm:$0xf]  ;;  %v4703_v22 = vld [vmem:[#allocation2 + $0x34c] sm:$0xf] }
 0x267   :  { %v4348_v38 = vor.u32 %v4722_v35, %v4347_v33  ;;  %v4349_v8 = vld [vmem:[#allocation2 + $0x3e0] sm:$0xf0]  ;;  %v4059_v1 = vld [vmem:[#allocation2 + $0x180] sm:$0xf]  ;;  %2600 = vmatpush.bf16.msra.mxu2 %v4092_v34  ;;  %s2979_s25 = sshll.u32 %s5679_s16, 4  ;;  %s4875_s26 = smov [#allocation8]   ;;  %s2980_s25 = int_to_ptr.hbm [resolvable:$true] %s2979_s25 }
 0x268   :  { %v4352_v42 = vor.u32 %v4718_v41, %v4349_v8  ;;  %v4650_v43 = vld [vmem:[#allocation2 + $0x19c] sm:$0xf0]  ;;  %2626 = vmatpush.bf16.msrb.mxu0 %v4096_v39  ;;  %v4646_v48 = vld [vmem:[#allocation2 + $0x184] sm:$0xf]  ;;  %2982 = dma.vmem_to_hbm [thread:$0]  %s2978_s22, 128, %s2980_s25, [#allocation6]  }
 0x269   :  { %v4315_v44 = vld [vmem:[#allocation2 + $0x380] sm:$0xf]  ;;  %2613 = vmatpush.bf16.msra.mxu3 %v4348_v38  ;;  %v4060_v45 = vor.u32 %v4650_v43, %v4059_v1  ;;  %v4061_v49 = vld [vmem:[#allocation2 + $0x1a0] sm:$0xf0]  ;;  %s2988_s6 = sshll.u32 %s4875_s26, 4  ;;  %s2990_s2 = sshll.u32 %s5680_s17, 4  ;;  %s2989_s6 = int_to_ptr.vmem [resolvable:$true] %s2988_s6  ;;  %s2991_s2 = int_to_ptr.hbm [resolvable:$true] %s2990_s2 }
 0x26a   :  { %v4714_v40 = vld [vmem:[#allocation2 + $0x39c] sm:$0xf0]  ;;  %v4710_v50 = vld [vmem:[#allocation2 + $0x384] sm:$0xf]  ;;  %2639 = vmatpush.bf16.msrb.mxu1 %v4352_v42  ;;  %v4064_v51 = vor.u32 %v4646_v48, %v4061_v49  ;;  %2993 = dma.vmem_to_hbm [thread:$0]  %s2989_s6, 128, %s2991_s2, [#allocation9]  }
 0x26b   :  { %v4316_v47 = vor.u32 %v4714_v40, %v4315_v44  ;;  %v4317_v52 = vld [vmem:[#allocation2 + $0x3a0] sm:$0xf0]  ;;  %v4027_v53 = vld [vmem:[#allocation2 + $0x140] sm:$0xf]  ;;  %2601 = vmatpush.bf16.msra.mxu2 %v4060_v45 }
 0x26c   :  { %v4642_v12 = vld [vmem:[#allocation2 + $0x15c] sm:$0xf0]  ;;  %v4320_v54 = vor.u32 %v4710_v50, %v4317_v52  ;;  %v4638_v57 = vld [vmem:[#allocation2 + $0x144] sm:$0xf]  ;;  %2627 = vmatpush.bf16.msrb.mxu0 %v4064_v51 }
 0x26d   :  { %v4283_v55 = vld [vmem:[#allocation2 + $0x340] sm:$0xf]  ;;  %v4028_v58 = vor.u32 %v4642_v12, %v4027_v53  ;;  %v4029_v59 = vld [vmem:[#allocation2 + $0x160] sm:$0xf0]  ;;  %2614 = vmatpush.bf16.msra.mxu3 %v4316_v47 }
 0x26e   :  { %v4706_v56 = vld [vmem:[#allocation2 + $0x35c] sm:$0xf0]  ;;  %v4702_v60 = vld [vmem:[#allocation2 + $0x344] sm:$0xf]  ;;  %v4032_v62 = vor.u32 %v4638_v57, %v4029_v59  ;;  %2640 = vmatpush.bf16.msrb.mxu1 %v4320_v54 }
 0x26f   :  { %v4285_v61 = vld [vmem:[#allocation2 + $0x360] sm:$0xf0]  ;;  %v4284_v21 = vor.u32 %v4706_v56, %v4283_v55  ;;  %v3995_v63 = vld [vmem:[#allocation2 + $0x100] sm:$0xf]  ;;  %2602 = vmatpush.bf16.msra.mxu2 %v4028_v58 }
 0x270   :  { %v4634_v0 = vld [vmem:[#allocation2 + $0x11c] sm:$0xf0]  ;;  %v4288_v5 = vor.u32 %v4702_v60, %v4285_v61  ;;  %v4630_v7 = vld [vmem:[#allocation2 + $0x104] sm:$0xf]  ;;  %2628 = vmatpush.bf16.msrb.mxu0 %v4032_v62  ;;  %v4099_v61 = vld [vmem:[#allocation2 + $0x1c8] sm:$0xf] }
 0x271   :  { %v4251_v4 = vld [vmem:[#allocation2 + $0x300] sm:$0xf]  ;;  %v3997_v10 = vld [vmem:[#allocation2 + $0x120] sm:$0xf0]  ;;  %v3996_v23 = vor.u32 %v4634_v0, %v3995_v63  ;;  %2615 = vmatpush.bf16.msra.mxu3 %v4284_v21  ;;  %v4659_v21 = vld [vmem:[#allocation2 + $0x1e4] sm:$0xf0] }
 0x272   :  { %v4698_v6 = vld [vmem:[#allocation2 + $0x31c] sm:$0xf0]  ;;  %v4694_v24 = vld [vmem:[#allocation2 + $0x304] sm:$0xf]  ;;  %v4000_v13 = vor.u32 %v4630_v7, %v3997_v10  ;;  %2641 = vmatpush.bf16.msrb.mxu1 %v4288_v5  ;;  %v4355_v62 = vld [vmem:[#allocation2 + $0x3c8] sm:$0xf] }
 0x273   :  { %v4253_v11 = vld [vmem:[#allocation2 + $0x320] sm:$0xf0]  ;;  %v4252_v26 = vor.u32 %v4698_v6, %v4251_v4  ;;  %v3963_v14 = vld [vmem:[#allocation2 + $0xc0] sm:$0xf]  ;;  %2603 = vmatpush.bf16.msra.mxu2 %v3996_v23  ;;  %v4723_v0 = vld [vmem:[#allocation2 + $0x3e4] sm:$0xf0]  ;;  %v4100_v23 = vor.u32 %v4659_v21, %v4099_v61 }
 0x274   :  { %v4626_v15 = vld [vmem:[#allocation2 + $0xdc] sm:$0xf0]  ;;  %v4256_v16 = vor.u32 %v4694_v24, %v4253_v11  ;;  %v4622_v18 = vld [vmem:[#allocation2 + $0xc4] sm:$0xf]  ;;  %2629 = vmatpush.bf16.msrb.mxu0 %v4000_v13  ;;  %v4655_v4 = vld [vmem:[#allocation2 + $0x1cc] sm:$0xf] }
 0x275   :  { %v4219_v31 = vld [vmem:[#allocation2 + $0x2c0] sm:$0xf]  ;;  %v3965_v2 = vld [vmem:[#allocation2 + $0xe0] sm:$0xf0]  ;;  %v3964_v9 = vor.u32 %v4626_v15, %v3963_v14  ;;  %2616 = vmatpush.bf16.msra.mxu3 %v4252_v26  ;;  %v4101_v5 = vld [vmem:[#allocation2 + $0x1e8] sm:$0xf0]  ;;  %v4356_v26 = vor.u32 %v4723_v0, %v4355_v62 }
 0x276   :  { %v4690_v17 = vld [vmem:[#allocation2 + $0x2dc] sm:$0xf0]  ;;  %v4686_v46 = vld [vmem:[#allocation2 + $0x2c4] sm:$0xf]  ;;  %v3968_v28 = vor.u32 %v4622_v18, %v3965_v2  ;;  %2642 = vmatpush.bf16.msrb.mxu1 %v4256_v16  ;;  %v4719_v10 = vld [vmem:[#allocation2 + $0x3cc] sm:$0xf]  ;;  %v4104_v13 = vor.u32 %v4655_v4, %v4101_v5 }
 0x277   :  { %v4221_v3 = vld [vmem:[#allocation2 + $0x2e0] sm:$0xf0]  ;;  %v4220_v19 = vor.u32 %v4690_v17, %v4219_v31  ;;  %v3931_v29 = vld [vmem:[#allocation2 + $0x80] sm:$0xf]  ;;  %2604 = vmatpush.bf16.msra.mxu2 %v3964_v9  ;;  %v4357_v24 = vld [vmem:[#allocation2 + $0x3e8] sm:$0xf0] }
 0x278   :  { %v4618_v30 = vld [vmem:[#allocation2 + $0x9c] sm:$0xf0]  ;;  %v4224_v33 = vor.u32 %v4686_v46, %v4221_v3  ;;  %v4614_v35 = vld [vmem:[#allocation2 + $0x84] sm:$0xf]  ;;  %2630 = vmatpush.bf16.msrb.mxu0 %v3968_v28  ;;  %v4067_v14 = vld [vmem:[#allocation2 + $0x188] sm:$0xf]  ;;  %v4360_v16 = vor.u32 %v4719_v10, %v4357_v24  ;;  %v5590_v46 = vpack.c.bf16 %v1806_v25, %v1806_v25 }
 0x279   :  { %v4187_v32 = vld [vmem:[#allocation2 + $0x280] sm:$0xf]  ;;  %v3933_v36 = vld [vmem:[#allocation2 + $0xa0] sm:$0xf0]  ;;  %v3932_v39 = vor.u32 %v4618_v30, %v3931_v29  ;;  %2617 = vmatpush.bf16.msra.mxu3 %v4220_v19  ;;  %v4651_v15 = vld [vmem:[#allocation2 + $0x1a4] sm:$0xf0]  ;;  %v5595_v19 = vpack.c.bf16 %v1807_v27, %v1807_v27 }
 0x27a   :  { %v4682_v34 = vld [vmem:[#allocation2 + $0x29c] sm:$0xf0]  ;;  %v4678_v37 = vld [vmem:[#allocation2 + $0x284] sm:$0xf]  ;;  %v3936_v8 = vor.u32 %v4614_v35, %v3933_v36  ;;  %2643 = vmatpush.bf16.msrb.mxu1 %v4224_v33  ;;  %v4323_v31 = vld [vmem:[#allocation2 + $0x388] sm:$0xf]  ;;  %v4068_v28 = vor.u32 %v4651_v15, %v4067_v14 }
 0x27b   :  { %v4189_v38 = vld [vmem:[#allocation2 + $0x2a0] sm:$0xf0]  ;;  %v4188_v41 = vor.u32 %v4682_v34, %v4187_v32  ;;  %v3899_v1 = vld [vmem:[#allocation2 + $0x40] sm:$0xf]  ;;  %2605 = vmatpush.bf16.msra.mxu2 %v3932_v39  ;;  %v4715_v17 = vld [vmem:[#allocation2 + $0x3a4] sm:$0xf0] }
 0x27c   :  { %v4610_v42 = vld [vmem:[#allocation2 + $0x5c] sm:$0xf0]  ;;  %v4192_v44 = vor.u32 %v4678_v37, %v4189_v38  ;;  %v4606_v45 = vld [vmem:[#allocation2 + $0x44] sm:$0xf]  ;;  %2631 = vmatpush.bf16.msrb.mxu0 %v3936_v8  ;;  %v4647_v18 = vld [vmem:[#allocation2 + $0x18c] sm:$0xf]  ;;  %v4324_v29 = vor.u32 %v4715_v17, %v4323_v31 }
 0x27d   :  { %v4155_v43 = vld [vmem:[#allocation2 + $0x240] sm:$0xf]  ;;  %v3901_v47 = vld [vmem:[#allocation2 + $0x60] sm:$0xf0]  ;;  %v3900_v50 = vor.u32 %v4610_v42, %v3899_v1  ;;  %2618 = vmatpush.bf16.msra.mxu3 %v4188_v41  ;;  %v4069_v2 = vld [vmem:[#allocation2 + $0x1a8] sm:$0xf0] }
 0x27e   :  { %v4674_v40 = vld [vmem:[#allocation2 + $0x25c] sm:$0xf0]  ;;  %v4670_v48 = vld [vmem:[#allocation2 + $0x244] sm:$0xf]  ;;  %v3904_v12 = vor.u32 %v4606_v45, %v3901_v47  ;;  %2644 = vmatpush.bf16.msrb.mxu1 %v4192_v44  ;;  %v4711_v3 = vld [vmem:[#allocation2 + $0x38c] sm:$0xf]  ;;  %v4072_v30 = vor.u32 %v4647_v18, %v4069_v2 }
 0x27f   :  { %v4157_v49 = vld [vmem:[#allocation2 + $0x260] sm:$0xf0]  ;;  %v3867_v51 = vld [vmem:[#allocation2] sm:$0xf]  ;;  %v4156_v53 = vor.u32 %v4674_v40, %v4155_v43  ;;  %2606 = vmatpush.bf16.msra.mxu2 %v3900_v50  ;;  %v4325_v9 = vld [vmem:[#allocation2 + $0x3a8] sm:$0xf0] }
 0x280   :  { %v4602_v52 = vld [vmem:[#allocation2 + $0x1c] sm:$0xf0]  ;;  %v4598_v56 = vld [vmem:[#allocation2 + $0x4] sm:$0xf]  ;;  %v4160_v57 = vor.u32 %v4670_v48, %v4157_v49  ;;  %2632 = vmatpush.bf16.msrb.mxu0 %v3904_v12  ;;  %v4643_v32 = vld [vmem:[#allocation2 + $0x164] sm:$0xf0]  ;;  %v4328_v33 = vor.u32 %v4711_v3, %v4325_v9 }
 0x281   :  { %v4123_v54 = vld [vmem:[#allocation2 + $0x200] sm:$0xf]  ;;  %v3869_v58 = vld [vmem:[#allocation2 + $0x20] sm:$0xf0]  ;;  %v3868_v63 = vor.u32 %v4602_v52, %v3867_v51  ;;  %2619 = vmatpush.bf16.msra.mxu3 %v4156_v53  ;;  %v4291_v25 = vld [vmem:[#allocation2 + $0x348] sm:$0xf]  ;;  %v4036_v37 = vor.u32 %v4643_v32, %v4035_v20 }
 0x282   :  { %v4666_v55 = vld [vmem:[#allocation2 + $0x21c] sm:$0xf0]  ;;  %v4662_v59 = vld [vmem:[#allocation2 + $0x204] sm:$0xf]  ;;  %v3872_v7 = vor.u32 %v4598_v56, %v3869_v58  ;;  %2645 = vmatpush.bf16.msrb.mxu1 %v4160_v57  ;;  %v4707_v34 = vld [vmem:[#allocation2 + $0x364] sm:$0xf0] }
 0x283   :  { %v4125_v60 = vld [vmem:[#allocation2 + $0x220] sm:$0xf0]  ;;  %v4124_v6 = vor.u32 %v4666_v55, %v4123_v54  ;;  %2607 = vmatpush.bf16.msra.mxu2 %v3868_v63  ;;  %v4639_v35 = vld [vmem:[#allocation2 + $0x14c] sm:$0xf]  ;;  %v4292_v38 = vor.u32 %v4707_v34, %v4291_v25  ;;  %v4003_v41 = vld [vmem:[#allocation2 + $0x108] sm:$0xf] }
 0x284   :  { %v4128_v11 = vor.u32 %v4662_v59, %v4125_v60  ;;  %2633 = vmatpush.bf16.msrb.mxu0 %v3872_v7  ;;  %v4037_v36 = vld [vmem:[#allocation2 + $0x168] sm:$0xf0]  ;;  %v4635_v8 = vld [vmem:[#allocation2 + $0x124] sm:$0xf0] }
 0x285   :  { %2620 = vmatpush.bf16.msra.mxu3 %v4124_v6  ;;  %v4293_v27 = vld [vmem:[#allocation2 + $0x368] sm:$0xf0]  ;;  %v4040_v39 = vor.u32 %v4639_v35, %v4037_v36  ;;  %v4259_v1 = vld [vmem:[#allocation2 + $0x308] sm:$0xf]  ;;  %v4004_v48 = vor.u32 %v4635_v8, %v4003_v41  ;;  %v4656_v41 = vld [vmem:[#allocation2 + $0x1d4] sm:$0xf] }
 0x286   :  { %2646 = vmatpush.bf16.msrb.mxu1 %v4128_v11  ;;  %2608 = vmatmul.bf16.vlgmr.msra.gmra.mxu2 %v5590_v46  ;;  %v4296_v42 = vor.u32 %v4703_v22, %v4293_v27  ;;  %v4699_v43 = vld [vmem:[#allocation2 + $0x324] sm:$0xf0]  ;;  %v4631_v44 = vld [vmem:[#allocation2 + $0x10c] sm:$0xf]  ;;  %v4107_v22 = vld [vmem:[#allocation2 + $0x1d0] sm:$0xf] }
 0x287   :  { %2652 = vmatpush.bf16.msrb.mxu2 %v4100_v23  ;;  %2634 = vmatmul.bf16.vlgmr.msrb.gmra.mxu0 %v5590_v46  ;;  %v4005_v40 = vld [vmem:[#allocation2 + $0x128] sm:$0xf0]  ;;  %v4260_v49 = vor.u32 %v4699_v43, %v4259_v1  ;;  %v3971_v51 = vld [vmem:[#allocation2 + $0xc8] sm:$0xf]  ;;  %v4660_v27 = vld [vmem:[#allocation2 + $0x1ec] sm:$0xf0] }
 0x288   :  { %2678 = vmatpush.bf16.msra.mxu0 %v4104_v13  ;;  %2621 = vmatmul.bf16.vlgmr.msra.gmra.mxu3 %v5595_v19  ;;  %v4695_v45 = vld [vmem:[#allocation2 + $0x30c] sm:$0xf]  ;;  %v4008_v50 = vor.u32 %v4631_v44, %v4005_v40  ;;  %v4627_v52 = vld [vmem:[#allocation2 + $0xe4] sm:$0xf0]  ;;  %v4109_v8 = vld [vmem:[#allocation2 + $0x1f0] sm:$0xf0] }
 0x289   :  { %2665 = vmatpush.bf16.msrb.mxu3 %v4356_v26  ;;  %2647 = vmatmul.bf16.vlgmr.msrb.gmra.mxu1 %v5595_v19  ;;  %v4261_v47 = vld [vmem:[#allocation2 + $0x328] sm:$0xf0]  ;;  %v4227_v53 = vld [vmem:[#allocation2 + $0x2c8] sm:$0xf]  ;;  %v3972_v59 = vor.u32 %v4627_v52, %v3971_v51  ;;  %v4720_v43 = vld [vmem:[#allocation2 + $0x3d4] sm:$0xf] }
 0x28a   :  { %2691 = vmatpush.bf16.msra.mxu1 %v4360_v16  ;;  %v4264_v12 = vor.u32 %v4695_v45, %v4261_v47  ;;  %v4691_v54 = vld [vmem:[#allocation2 + $0x2e4] sm:$0xf0]  ;;  %v4623_v55 = vld [vmem:[#allocation2 + $0xcc] sm:$0xf]  ;;  %v4365_v44 = vld [vmem:[#allocation2 + $0x3f0] sm:$0xf0]  ;;  %v4108_v45 = vor.u32 %v4660_v27, %v4107_v22 }
 0x28b   :  { %2653 = vmatpush.bf16.msrb.mxu2 %v4068_v28  ;;  %v3973_v56 = vld [vmem:[#allocation2 + $0xe8] sm:$0xf0]  ;;  %v4228_v60 = vor.u32 %v4691_v54, %v4227_v53  ;;  %v3939_v21 = vld [vmem:[#allocation2 + $0x88] sm:$0xf]  ;;  %v4331_v51 = vld [vmem:[#allocation2 + $0x390] sm:$0xf]  ;;  %v4368_v52 = vor.u32 %v4720_v43, %v4365_v44 }
 0x28c   :  { %2679 = vmatpush.bf16.msra.mxu0 %v4072_v30  ;;  %v4687_v57 = vld [vmem:[#allocation2 + $0x2cc] sm:$0xf]  ;;  %v3976_v61 = vor.u32 %v4623_v55, %v3973_v56  ;;  %v4619_v62 = vld [vmem:[#allocation2 + $0xa4] sm:$0xf0]  ;;  %v4716_v53 = vld [vmem:[#allocation2 + $0x3ac] sm:$0xf0] }
 0x28d   :  { %2666 = vmatpush.bf16.msrb.mxu3 %v4324_v29  ;;  %v4229_v58 = vld [vmem:[#allocation2 + $0x2e8] sm:$0xf0]  ;;  %v4195_v63 = vld [vmem:[#allocation2 + $0x288] sm:$0xf]  ;;  %v3940_v24 = vor.u32 %v4619_v62, %v3939_v21  ;;  %v4077_v54 = vld [vmem:[#allocation2 + $0x1b0] sm:$0xf0] }
 0x28e   :  { %2692 = vmatpush.bf16.msra.mxu1 %v4328_v33  ;;  %v4232_v0 = vor.u32 %v4687_v57, %v4229_v58  ;;  %v4683_v4 = vld [vmem:[#allocation2 + $0x2a4] sm:$0xf0]  ;;  %v4615_v5 = vld [vmem:[#allocation2 + $0x8c] sm:$0xf]  ;;  %v4712_v55 = vld [vmem:[#allocation2 + $0x394] sm:$0xf]  ;;  %v4332_v58 = vor.u32 %v4716_v53, %v4331_v51 }
 0x28f   :  { %2654 = vmatpush.bf16.msrb.mxu2 %v4036_v37  ;;  %v3941_v6 = vld [vmem:[#allocation2 + $0xa8] sm:$0xf0]  ;;  %v4196_v11 = vor.u32 %v4683_v4, %v4195_v63  ;;  %v3907_v26 = vld [vmem:[#allocation2 + $0x48] sm:$0xf]  ;;  %v4363_v37 = vld [vmem:[#allocation2 + $0x3d0] sm:$0xf] }
 0x290   :  { %2680 = vmatpush.bf16.msra.mxu0 %v4040_v39  ;;  %v4679_v7 = vld [vmem:[#allocation2 + $0x28c] sm:$0xf]  ;;  %v3944_v23 = vor.u32 %v4615_v5, %v3941_v6  ;;  %v4611_v13 = vld [vmem:[#allocation2 + $0x64] sm:$0xf0]  ;;  %v4724_v39 = vld [vmem:[#allocation2 + $0x3ec] sm:$0xf0] }
 0x291   :  { %2667 = vmatpush.bf16.msrb.mxu3 %v4292_v38  ;;  %v4197_v10 = vld [vmem:[#allocation2 + $0x2a8] sm:$0xf0]  ;;  %v4163_v14 = vld [vmem:[#allocation2 + $0x248] sm:$0xf]  ;;  %v3908_v3 = vor.u32 %v4611_v13, %v3907_v26  ;;  %v4364_v47 = vor.u32 %v4724_v39, %v4363_v37  ;;  %v4333_v56 = vld [vmem:[#allocation2 + $0x3b0] sm:$0xf0] }
 0x292   :  { %2693 = vmatpush.bf16.msra.mxu1 %v4296_v42  ;;  %v4200_v15 = vor.u32 %v4679_v7, %v4197_v10  ;;  %v4675_v31 = vld [vmem:[#allocation2 + $0x264] sm:$0xf0]  ;;  %v4607_v16 = vld [vmem:[#allocation2 + $0x4c] sm:$0xf]  ;;  %v4299_v21 = vld [vmem:[#allocation2 + $0x350] sm:$0xf]  ;;  %v4336_v62 = vor.u32 %v4712_v55, %v4333_v56 }
 0x293   :  { %2655 = vmatpush.bf16.msrb.mxu2 %v4004_v48  ;;  %v3909_v17 = vld [vmem:[#allocation2 + $0x68] sm:$0xf0]  ;;  %v3875_v9 = vld [vmem:[#allocation2 + $0x8] sm:$0xf]  ;;  %v4164_v29 = vor.u32 %v4675_v31, %v4163_v14  ;;  %v4112_v48 = vor.u32 %v4656_v41, %v4109_v8  ;;  %v4708_v63 = vld [vmem:[#allocation2 + $0x36c] sm:$0xf0] }
 0x294   :  { %2681 = vmatpush.bf16.msra.mxu0 %v4008_v50  ;;  %v4671_v18 = vld [vmem:[#allocation2 + $0x24c] sm:$0xf]  ;;  %v4603_v28 = vld [vmem:[#allocation2 + $0x24] sm:$0xf0]  ;;  %v3912_v30 = vor.u32 %v4607_v16, %v3909_v17  ;;  %v4652_v50 = vld [vmem:[#allocation2 + $0x1ac] sm:$0xf0]  ;;  %v4300_v10 = vor.u32 %v4708_v63, %v4299_v21 }
 0x295   :  { %2668 = vmatpush.bf16.msrb.mxu3 %v4260_v49  ;;  %v4165_v2 = vld [vmem:[#allocation2 + $0x268] sm:$0xf0]  ;;  %v4131_v20 = vld [vmem:[#allocation2 + $0x208] sm:$0xf]  ;;  %v3876_v38 = vor.u32 %v4603_v28, %v3875_v9  ;;  %v4075_v49 = vld [vmem:[#allocation2 + $0x190] sm:$0xf] }
 0x296   :  { %2694 = vmatpush.bf16.msra.mxu1 %v4264_v12  ;;  %v4667_v32 = vld [vmem:[#allocation2 + $0x224] sm:$0xf0]  ;;  %v4599_v25 = vld [vmem:[#allocation2 + $0xc] sm:$0xf]  ;;  %v4168_v33 = vor.u32 %v4671_v18, %v4165_v2  ;;  %v4648_v12 = vld [vmem:[#allocation2 + $0x194] sm:$0xf]  ;;  %v4076_v57 = vor.u32 %v4652_v50, %v4075_v49 }
 0x297   :  { %2656 = vmatpush.bf16.msrb.mxu2 %v3972_v59  ;;  %v3877_v34 = vld [vmem:[#allocation2 + $0x28] sm:$0xf0]  ;;  %v4132_v1 = vor.u32 %v4667_v32, %v4131_v20  ;;  %v4080_v59 = vor.u32 %v4648_v12, %v4077_v54  ;;  %v4045_v4 = vld [vmem:[#allocation2 + $0x170] sm:$0xf0]  ;;  %v4267_v26 = vld [vmem:[#allocation2 + $0x310] sm:$0xf] }
 0x298   :  { %2682 = vmatpush.bf16.msra.mxu0 %v3976_v61  ;;  %v4663_v35 = vld [vmem:[#allocation2 + $0x20c] sm:$0xf]  ;;  %v3880_v42 = vor.u32 %v4599_v25, %v3877_v34  ;;  %v4644_v61 = vld [vmem:[#allocation2 + $0x16c] sm:$0xf0]  ;;  %v4704_v5 = vld [vmem:[#allocation2 + $0x354] sm:$0xf] }
 0x299   :  { %2669 = vmatpush.bf16.msrb.mxu3 %v4228_v60  ;;  %v4133_v36 = vld [vmem:[#allocation2 + $0x228] sm:$0xf0]  ;;  %v4043_v60 = vld [vmem:[#allocation2 + $0x150] sm:$0xf]  ;;  %v4301_v6 = vld [vmem:[#allocation2 + $0x370] sm:$0xf0] }
 0x29a   :  { %2695 = vmatpush.bf16.msra.mxu1 %v4232_v0  ;;  %v4136_v40 = vor.u32 %v4663_v35, %v4133_v36  ;;  %v4640_v0 = vld [vmem:[#allocation2 + $0x154] sm:$0xf]  ;;  %v4044_v7 = vor.u32 %v4644_v61, %v4043_v60  ;;  %v4304_v13 = vor.u32 %v4704_v5, %v4301_v6  ;;  %v4700_v14 = vld [vmem:[#allocation2 + $0x32c] sm:$0xf0]  ;;  %v4115_v5 = vld [vmem:[#allocation2 + $0x1d8] sm:$0xf] }
 0x29b   :  { %2657 = vmatpush.bf16.msrb.mxu2 %v3940_v24  ;;  %v4048_v24 = vor.u32 %v4640_v0, %v4045_v4  ;;  %v4013_v31 = vld [vmem:[#allocation2 + $0x130] sm:$0xf0]  ;;  %v4268_v2 = vor.u32 %v4700_v14, %v4267_v26  ;;  %v3979_v9 = vld [vmem:[#allocation2 + $0xd0] sm:$0xf]  ;;  %v4661_v6 = vld [vmem:[#allocation2 + $0x1f4] sm:$0xf0] }
 0x29c   :  { %2683 = vmatpush.bf16.msra.mxu0 %v3944_v23  ;;  %v4636_v23 = vld [vmem:[#allocation2 + $0x12c] sm:$0xf0]  ;;  %v4696_v16 = vld [vmem:[#allocation2 + $0x314] sm:$0xf]  ;;  %v4721_v14 = vld [vmem:[#allocation2 + $0x3dc] sm:$0xf] }
 0x29d   :  { %2670 = vmatpush.bf16.msrb.mxu3 %v4196_v11  ;;  %v4011_v11 = vld [vmem:[#allocation2 + $0x110] sm:$0xf]  ;;  %v4269_v17 = vld [vmem:[#allocation2 + $0x330] sm:$0xf0] }
 0x29e   :  { %2696 = vmatpush.bf16.msra.mxu1 %v4200_v15  ;;  %v4632_v15 = vld [vmem:[#allocation2 + $0x114] sm:$0xf]  ;;  %v4012_v18 = vor.u32 %v4636_v23, %v4011_v11  ;;  %v4628_v28 = vld [vmem:[#allocation2 + $0xec] sm:$0xf0]  ;;  %v4657_v11 = vld [vmem:[#allocation2 + $0x1dc] sm:$0xf] }
 0x29f   :  { %2658 = vmatpush.bf16.msrb.mxu2 %v3908_v3  ;;  %v4016_v3 = vor.u32 %v4632_v15, %v4013_v31  ;;  %v4692_v20 = vld [vmem:[#allocation2 + $0x2ec] sm:$0xf0]  ;;  %v4624_v32 = vld [vmem:[#allocation2 + $0xd4] sm:$0xf]  ;;  %v3980_v35 = vor.u32 %v4628_v28, %v3979_v9  ;;  %v4117_v23 = vld [vmem:[#allocation2 + $0x1f8] sm:$0xf0] }
 0x2a0   :  { %2684 = vmatpush.bf16.msra.mxu0 %v3912_v30  ;;  %v4272_v30 = vor.u32 %v4696_v16, %v4269_v17  ;;  %v3981_v25 = vld [vmem:[#allocation2 + $0xf0] sm:$0xf0]  ;;  %v3947_v27 = vld [vmem:[#allocation2 + $0x90] sm:$0xf]  ;;  %v4373_v15 = vld [vmem:[#allocation2 + $0x3f8] sm:$0xf0]  ;;  %v4116_v16 = vor.u32 %v4661_v6, %v4115_v5 }
 0x2a1   :  { %2671 = vmatpush.bf16.msrb.mxu3 %v4164_v29  ;;  %v4235_v29 = vld [vmem:[#allocation2 + $0x2d0] sm:$0xf]  ;;  %v4237_v34 = vld [vmem:[#allocation2 + $0x2f0] sm:$0xf0]  ;;  %v3984_v22 = vor.u32 %v4624_v32, %v3981_v25  ;;  %v4339_v9 = vld [vmem:[#allocation2 + $0x398] sm:$0xf]  ;;  %v4376_v28 = vor.u32 %v4721_v14, %v4373_v15 }
 0x2a2   :  { %2697 = vmatpush.bf16.msra.mxu1 %v4168_v33  ;;  %v4688_v33 = vld [vmem:[#allocation2 + $0x2d4] sm:$0xf]  ;;  %v4236_v36 = vor.u32 %v4692_v20, %v4235_v29  ;;  %v4620_v37 = vld [vmem:[#allocation2 + $0xac] sm:$0xf0]  ;;  %v4717_v29 = vld [vmem:[#allocation2 + $0x3b4] sm:$0xf0] }
 0x2a3   :  { %2659 = vmatpush.bf16.msrb.mxu2 %v3876_v38  ;;  %v4203_v38 = vld [vmem:[#allocation2 + $0x290] sm:$0xf]  ;;  %v4240_v39 = vor.u32 %v4688_v33, %v4237_v34  ;;  %v4616_v8 = vld [vmem:[#allocation2 + $0x94] sm:$0xf]  ;;  %v3948_v44 = vor.u32 %v4620_v37, %v3947_v27  ;;  %v4085_v20 = vld [vmem:[#allocation2 + $0x1b8] sm:$0xf0]  ;;  %v4340_v34 = vor.u32 %v4717_v29, %v4339_v9 }
 0x2a4   :  { %2685 = vmatpush.bf16.msra.mxu0 %v3880_v42  ;;  %v4684_v41 = vld [vmem:[#allocation2 + $0x2ac] sm:$0xf0]  ;;  %v4680_v42 = vld [vmem:[#allocation2 + $0x294] sm:$0xf]  ;;  %v4713_v32 = vld [vmem:[#allocation2 + $0x39c] sm:$0xf] }
 0x2a5   :  { %2672 = vmatpush.bf16.msrb.mxu3 %v4132_v1  ;;  %v3949_v1 = vld [vmem:[#allocation2 + $0xb0] sm:$0xf0]  ;;  %v4171_v49 = vld [vmem:[#allocation2 + $0x250] sm:$0xf]  ;;  %v4341_v25 = vld [vmem:[#allocation2 + $0x3b8] sm:$0xf0] }
 0x2a6   :  { %2698 = vmatpush.bf16.msra.mxu1 %v4136_v40  ;;  %2660 = vmatmul.bf16.vlgmr.msrb.gmra.mxu2 %v5590_v46  ;;  %v4205_v43 = vld [vmem:[#allocation2 + $0x2b0] sm:$0xf0]  ;;  %v4204_v40 = vor.u32 %v4684_v41, %v4203_v38  ;;  %v4676_v51 = vld [vmem:[#allocation2 + $0x26c] sm:$0xf0]  ;;  %v4307_v27 = vld [vmem:[#allocation2 + $0x358] sm:$0xf]  ;;  %v4344_v37 = vor.u32 %v4713_v32, %v4341_v25 }
 0x2a7   :  { %2704 = vmatpush.bf16.msra.mxu2 %v4108_v45  ;;  %2686 = vmatmul.bf16.vlgmr.msra.gmra.mxu0 %v5590_v46  ;;  %v3952_v45 = vor.u32 %v4616_v8, %v3949_v1  ;;  %v4208_v50 = vor.u32 %v4680_v42, %v4205_v43  ;;  %v3917_v53 = vld [vmem:[#allocation2 + $0x70] sm:$0xf0]  ;;  %v3883_v56 = vld [vmem:[#allocation2 + $0x10] sm:$0xf]  ;;  %v4709_v38 = vld [vmem:[#allocation2 + $0x374] sm:$0xf0] }
 0x2a8   :  { %2730 = vmatpush.bf16.msrb.mxu0 %v4112_v48  ;;  %2673 = vmatmul.bf16.vlgmr.msrb.gmra.mxu3 %v5595_v19  ;;  %v4612_v48 = vld [vmem:[#allocation2 + $0x6c] sm:$0xf0]  ;;  %v4672_v12 = vld [vmem:[#allocation2 + $0x254] sm:$0xf]  ;;  %v4053_v41 = vld [vmem:[#allocation2 + $0x178] sm:$0xf0]  ;;  %v4308_v43 = vor.u32 %v4709_v38, %v4307_v27 }
 0x2a9   :  { %2717 = vmatpush.bf16.msra.mxu3 %v4364_v47  ;;  %2699 = vmatmul.bf16.vlgmr.msra.gmra.mxu1 %v5595_v19  ;;  %v3915_v47 = vld [vmem:[#allocation2 + $0x50] sm:$0xf]  ;;  %v4173_v54 = vld [vmem:[#allocation2 + $0x270] sm:$0xf0]  ;;  %v4705_v8 = vld [vmem:[#allocation2 + $0x35c] sm:$0xf] }
 0x2aa   :  { %2743 = vmatpush.bf16.msrb.mxu1 %v4368_v52  ;;  %v4608_v52 = vld [vmem:[#allocation2 + $0x54] sm:$0xf]  ;;  %v3916_v55 = vor.u32 %v4612_v48, %v3915_v47  ;;  %v4139_v60 = vld [vmem:[#allocation2 + $0x210] sm:$0xf]  ;;  %v4309_v1 = vld [vmem:[#allocation2 + $0x378] sm:$0xf0] }
 0x2ab   :  { %2705 = vmatpush.bf16.msra.mxu2 %v4076_v57  ;;  %v4604_v57 = vld [vmem:[#allocation2 + $0x2c] sm:$0xf0]  ;;  %v4600_v21 = vld [vmem:[#allocation2 + $0x14] sm:$0xf]  ;;  %v4275_v47 = vld [vmem:[#allocation2 + $0x318] sm:$0xf]  ;;  %v4312_v48 = vor.u32 %v4705_v8, %v4309_v1 }
 0x2ac   :  { %2731 = vmatpush.bf16.msrb.mxu0 %v4080_v59  ;;  %v3920_v59 = vor.u32 %v4608_v52, %v3917_v53  ;;  %v4668_v61 = vld [vmem:[#allocation2 + $0x22c] sm:$0xf0]  ;;  %v3885_v63 = vld [vmem:[#allocation2 + $0x30] sm:$0xf0]  ;;  %v4697_v52 = vld [vmem:[#allocation2 + $0x31c] sm:$0xf] }
 0x2ad   :  { %2718 = vmatpush.bf16.msra.mxu3 %v4332_v58  ;;  %v4172_v58 = vor.u32 %v4676_v51, %v4171_v49  ;;  %v4664_v0 = vld [vmem:[#allocation2 + $0x214] sm:$0xf]  ;;  %v4140_v26 = vor.u32 %v4668_v61, %v4139_v60  ;;  %v4701_v49 = vld [vmem:[#allocation2 + $0x334] sm:$0xf0]  ;;  %v4021_v51 = vld [vmem:[#allocation2 + $0x138] sm:$0xf0] }
 0x2ae   :  { %2744 = vmatpush.bf16.msrb.mxu1 %v4336_v62  ;;  %v4176_v62 = vor.u32 %v4672_v12, %v4173_v54  ;;  %v4141_v4 = vld [vmem:[#allocation2 + $0x230] sm:$0xf0]  ;;  %v4277_v53 = vld [vmem:[#allocation2 + $0x338] sm:$0xf0]  ;;  %v4276_v54 = vor.u32 %v4701_v49, %v4275_v47  ;;  %v4693_v60 = vld [vmem:[#allocation2 + $0x2f4] sm:$0xf0] }
 0x2af   :  { %2706 = vmatpush.bf16.msra.mxu2 %v4044_v7  ;;  %v4371_v7 = vld [vmem:[#allocation2 + $0x3d8] sm:$0xf]  ;;  %v4144_v31 = vor.u32 %v4664_v0, %v4141_v4  ;;  %v4625_v61 = vld [vmem:[#allocation2 + $0xdc] sm:$0xf] }
 0x2b0   :  { %2732 = vmatpush.bf16.msrb.mxu0 %v4048_v24  ;;  %v4725_v24 = vld [vmem:[#allocation2 + $0x3f4] sm:$0xf0]  ;;  %v4213_v14 = vld [vmem:[#allocation2 + $0x2b8] sm:$0xf0] }
 0x2b1   :  { %2719 = vmatpush.bf16.msra.mxu3 %v4300_v10  ;;  %v3884_v10 = vor.u32 %v4604_v57, %v3883_v56  ;;  %v4372_v17 = vor.u32 %v4725_v24, %v4371_v7  ;;  %v3987_v56 = vld [vmem:[#allocation2 + $0xd8] sm:$0xf]  ;;  %v3925_v29 = vld [vmem:[#allocation2 + $0x78] sm:$0xf0] }
 0x2b2   :  { %2745 = vmatpush.bf16.msrb.mxu1 %v4304_v13  ;;  %v3888_v13 = vor.u32 %v4600_v21, %v3885_v63  ;;  %v4629_v57 = vld [vmem:[#allocation2 + $0xf4] sm:$0xf0]  ;;  %v3989_v21 = vld [vmem:[#allocation2 + $0xf8] sm:$0xf0] }
 0x2b3   :  { %2707 = vmatpush.bf16.msra.mxu2 %v4012_v18  ;;  %v4120_v18 = vor.u32 %v4657_v11, %v4117_v23  ;;  %v4245_v63 = vld [vmem:[#allocation2 + $0x2f8] sm:$0xf0]  ;;  %v3988_v0 = vor.u32 %v4629_v57, %v3987_v56  ;;  %v3992_v5 = vor.u32 %v4625_v61, %v3989_v21  ;;  %v3955_v6 = vld [vmem:[#allocation2 + $0x98] sm:$0xf] }
 0x2b4   :  { %2733 = vmatpush.bf16.msrb.mxu0 %v4016_v3  ;;  %v4653_v3 = vld [vmem:[#allocation2 + $0x1b4] sm:$0xf0]  ;;  %v4617_v23 = vld [vmem:[#allocation2 + $0x9c] sm:$0xf] }
 0x2b5   :  { %2720 = vmatpush.bf16.msra.mxu3 %v4268_v2  ;;  %v4083_v2 = vld [vmem:[#allocation2 + $0x198] sm:$0xf]  ;;  %v3893_v38 = vld [vmem:[#allocation2 + $0x38] sm:$0xf0] }
 0x2b6   :  { %2746 = vmatpush.bf16.msrb.mxu1 %v4272_v30  ;;  %v4649_v30 = vld [vmem:[#allocation2 + $0x19c] sm:$0xf]  ;;  %v4084_v33 = vor.u32 %v4653_v3, %v4083_v2  ;;  %v4621_v7 = vld [vmem:[#allocation2 + $0xb4] sm:$0xf0] }
 0x2b7   :  { %2708 = vmatpush.bf16.msra.mxu2 %v3980_v35  ;;  %v4088_v35 = vor.u32 %v4649_v30, %v4085_v20  ;;  %v4685_v11 = vld [vmem:[#allocation2 + $0x2b4] sm:$0xf0]  ;;  %v3956_v15 = vor.u32 %v4621_v7, %v3955_v6  ;;  %v4673_v30 = vld [vmem:[#allocation2 + $0x25c] sm:$0xf] }
 0x2b8   :  { %2734 = vmatpush.bf16.msrb.mxu0 %v3984_v22  ;;  %v4645_v22 = vld [vmem:[#allocation2 + $0x174] sm:$0xf0]  ;;  %v4181_v20 = vld [vmem:[#allocation2 + $0x278] sm:$0xf0] }
 0x2b9   :  { %2721 = vmatpush.bf16.msra.mxu3 %v4236_v36  ;;  %v4051_v36 = vld [vmem:[#allocation2 + $0x158] sm:$0xf] }
 0x2ba   :  { %2747 = vmatpush.bf16.msrb.mxu1 %v4240_v39  ;;  %v4641_v39 = vld [vmem:[#allocation2 + $0x15c] sm:$0xf]  ;;  %v4052_v42 = vor.u32 %v4645_v22, %v4051_v36  ;;  %v4179_v2 = vld [vmem:[#allocation2 + $0x258] sm:$0xf]  ;;  %v4184_v22 = vor.u32 %v4673_v30, %v4181_v20 }
 0x2bb   :  { %2709 = vmatpush.bf16.msra.mxu2 %v3948_v44  ;;  %v4056_v44 = vor.u32 %v4641_v39, %v4053_v41  ;;  %v4677_v9 = vld [vmem:[#allocation2 + $0x274] sm:$0xf0]  ;;  %v4665_v39 = vld [vmem:[#allocation2 + $0x21c] sm:$0xf] }
 0x2bc   :  { %2735 = vmatpush.bf16.msrb.mxu0 %v3952_v45  ;;  %v4637_v45 = vld [vmem:[#allocation2 + $0x134] sm:$0xf0]  ;;  %v4180_v25 = vor.u32 %v4677_v9, %v4179_v2  ;;  %v4149_v41 = vld [vmem:[#allocation2 + $0x238] sm:$0xf0] }
 0x2bd   :  { %2722 = vmatpush.bf16.msra.mxu3 %v4204_v40  ;;  %v4019_v40 = vld [vmem:[#allocation2 + $0x118] sm:$0xf] }
 0x2be   :  { %2748 = vmatpush.bf16.msrb.mxu1 %v4208_v50  ;;  %v4633_v50 = vld [vmem:[#allocation2 + $0x11c] sm:$0xf]  ;;  %v4020_v12 = vor.u32 %v4637_v45, %v4019_v40  ;;  %v4147_v36 = vld [vmem:[#allocation2 + $0x218] sm:$0xf] }
 0x2bf   :  { %2710 = vmatpush.bf16.msra.mxu2 %v3916_v55  ;;  %v4024_v55 = vor.u32 %v4633_v50, %v4021_v51  ;;  %v4669_v27 = vld [vmem:[#allocation2 + $0x234] sm:$0xf0] }
 0x2c0   :  { %2736 = vmatpush.bf16.msrb.mxu0 %v3920_v59  ;;  %v4280_v59 = vor.u32 %v4697_v52, %v4277_v53  ;;  %v4148_v1 = vor.u32 %v4669_v27, %v4147_v36 }
 0x2c1   :  { %2723 = vmatpush.bf16.msra.mxu3 %v4172_v58  ;;  %v4243_v58 = vld [vmem:[#allocation2 + $0x2d8] sm:$0xf] }
 0x2c2   :  { %2749 = vmatpush.bf16.msrb.mxu1 %v4176_v62  ;;  %v4689_v62 = vld [vmem:[#allocation2 + $0x2dc] sm:$0xf]  ;;  %v4244_v4 = vor.u32 %v4693_v60, %v4243_v58 }
 0x2c3   :  { %2711 = vmatpush.bf16.msra.mxu2 %v3884_v10  ;;  %v4211_v10 = vld [vmem:[#allocation2 + $0x298] sm:$0xf]  ;;  %v4248_v24 = vor.u32 %v4689_v62, %v4245_v63 }
 0x2c4   :  { %2737 = vmatpush.bf16.msrb.mxu0 %v3888_v13  ;;  %v4681_v13 = vld [vmem:[#allocation2 + $0x29c] sm:$0xf] }
 0x2c5   :  { %2724 = vmatpush.bf16.msra.mxu3 %v4140_v26  ;;  %v3957_v26 = vld [vmem:[#allocation2 + $0xb8] sm:$0xf0]  ;;  %v4216_v3 = vor.u32 %v4681_v13, %v4213_v14 }
 0x2c6   :  { %2750 = vmatpush.bf16.msrb.mxu1 %v4144_v31  ;;  %2712 = vmatmul.bf16.vlgmr.msra.gmra.mxu2 %v5590_v46  ;;  %v4212_v31 = vor.u32 %v4685_v11, %v4211_v10 }
 0x2c7   :  { %2756 = vmatpush.bf16.msrb.mxu2 %v4116_v16  ;;  %2738 = vmatmul.bf16.vlgmr.msrb.gmra.mxu0 %v5590_v46  ;;  %v3960_v16 = vor.u32 %v4617_v23, %v3957_v26 }
 0x2c8   :  { %2782 = vmatpush.bf16.msra.mxu0 %v4120_v18  ;;  %2725 = vmatmul.bf16.vlgmr.msra.gmra.mxu3 %v5595_v19  ;;  %v4613_v18 = vld [vmem:[#allocation2 + $0x74] sm:$0xf0] }
 0x2c9   :  { %2769 = vmatpush.bf16.msrb.mxu3 %v4372_v17  ;;  %2751 = vmatmul.bf16.vlgmr.msrb.gmra.mxu1 %v5595_v19  ;;  %v3923_v17 = vld [vmem:[#allocation2 + $0x58] sm:$0xf] }
 0x2ca   :  { %2795 = vmatpush.bf16.msra.mxu1 %v4376_v28  ;;  %v4609_v28 = vld [vmem:[#allocation2 + $0x5c] sm:$0xf]  ;;  %v3924_v32 = vor.u32 %v4613_v18, %v3923_v17 }
 0x2cb   :  { %2757 = vmatpush.bf16.msrb.mxu2 %v4084_v33  ;;  %v3928_v33 = vor.u32 %v4609_v28, %v3925_v29 }
 0x2cc   :  { %2783 = vmatpush.bf16.msra.mxu0 %v4088_v35  ;;  %v4605_v35 = vld [vmem:[#allocation2 + $0x34] sm:$0xf0] }
 0x2cd   :  { %2770 = vmatpush.bf16.msrb.mxu3 %v4340_v34  ;;  %v3891_v34 = vld [vmem:[#allocation2 + $0x18] sm:$0xf] }
 0x2ce   :  { %2796 = vmatpush.bf16.msra.mxu1 %v4344_v37  ;;  %v4601_v37 = vld [vmem:[#allocation2 + $0x1c] sm:$0xf]  ;;  %v3892_v8 = vor.u32 %v4605_v35, %v3891_v34 }
 0x2cf   :  { %2758 = vmatpush.bf16.msrb.mxu2 %v4052_v42  ;;  %v3896_v42 = vor.u32 %v4601_v37, %v3893_v38 }
 0x2d0   :  { %2784 = vmatpush.bf16.msra.mxu0 %v4056_v44  ;;  %v5616_v44 = vld [vmem:[%s5677_s14] sm:$0xff] }
 0x2d1   :  { %2771 = vmatpush.bf16.msrb.mxu3 %v4308_v43  ;;  %v4152_v43 = vor.u32 %v4665_v39, %v4149_v41  ;;  %v1945_v40 = vperm.slane %v5616_v44, 1  ;;  %v1947_v7 = vperm.slane %v5616_v44, 3  ;;  %v1946_v2 = vperm.slane %v5616_v44, 2 }
 0x2d2   :  { %2797 = vmatpush.bf16.msra.mxu1 %v4312_v48 }
 0x2d3   :  { %2759 = vmatpush.bf16.msrb.mxu2 %v4020_v12 }
 0x2d4   :  { %2785 = vmatpush.bf16.msra.mxu0 %v4024_v55 }
 0x2d5   :  { %2772 = vmatpush.bf16.msrb.mxu3 %v4276_v54 }
 0x2d6   :  { %2798 = vmatpush.bf16.msra.mxu1 %v4280_v59 }
 0x2d7   :  { %2760 = vmatpush.bf16.msrb.mxu2 %v3988_v0 }
 0x2d8   :  { %2786 = vmatpush.bf16.msra.mxu0 %v3992_v5 }
 0x2d9   :  { %2773 = vmatpush.bf16.msrb.mxu3 %v4244_v4 }
 0x2da   :  { %2799 = vmatpush.bf16.msra.mxu1 %v4248_v24 }
 0x2db   :  { %2761 = vmatpush.bf16.msrb.mxu2 %v3956_v15 }
 0x2dc   :  { %2787 = vmatpush.bf16.msra.mxu0 %v3960_v16 }
 0x2dd   :  { %2774 = vmatpush.bf16.msrb.mxu3 %v4212_v31 }
 0x2de   :  { %2800 = vmatpush.bf16.msra.mxu1 %v4216_v3 }
 0x2df   :  { %2762 = vmatpush.bf16.msrb.mxu2 %v3924_v32 }
 0x2e0   :  { %2788 = vmatpush.bf16.msra.mxu0 %v3928_v33 }
 0x2e1   :  { %2775 = vmatpush.bf16.msrb.mxu3 %v4180_v25 }
 0x2e2   :  { %2801 = vmatpush.bf16.msra.mxu1 %v4184_v22 }
 0x2e3   :  { %2763 = vmatpush.bf16.msrb.mxu2 %v3892_v8 }
 0x2e4   :  { %2789 = vmatpush.bf16.msra.mxu0 %v3896_v42 }
 0x2e5   :  { %2776 = vmatpush.bf16.msrb.mxu3 %v4148_v1 }
 0x2e6   :  { %2802 = vmatpush.bf16.msra.mxu1 %v4152_v43  ;;  %2764 = vmatmul.bf16.vlgmr.msrb.gmra.mxu2 %v5590_v46 }
 0x2e7   :  { %2790 = vmatmul.bf16.vlgmr.msra.gmra.mxu0 %v5590_v46 }
 0x2e8   :  { %2777 = vmatmul.bf16.vlgmr.msrb.gmra.mxu3 %v5595_v19 }
 0x2e9   :  { %2803 = vmatmul.bf16.vlgmr.msra.gmra.mxu1 %v5595_v19  ;;  %v1944_v19 = vperm.slane %v5616_v44, 0 }
 0x304   :  { %v2635_v45 = vpop.f32.mrf.mxu0 }
 0x305   :  { %v2636_v47 = vadd.f32 %v2635_v45, %v1945_v40 }
 0x306   :  { %v2648_v46 = vpop.f32.mrf.mxu1 }
 0x307   :  { %v2649_v48 = vadd.f32 %v2648_v46, %v2636_v47 }
 0x309   :  { %v2609_v49 = vpop.f32.mrf.mxu2  ;;  %v4378_v50 = vmul.f32 -1.442695, %v2649_v48 }
 0x30a   :  { %v2610_v51 = vadd.f32 %v2609_v49, %v1944_v19  ;;  %v1949_v19 = vperm.slane %v5616_v44, 5 }
 0x30b   :  { %v2622_v52 = vpop.f32.mrf.mxu3  ;;  %4734 = vpow2.f32 %v4378_v50 }
 0x30c   :  { %v2623_v53 = vadd.f32 %v2622_v52, %v2610_v51  ;;  %v2637_v12 = vpop.f32.mrf.mxu0 }
 0x30e   :  { %v2650_v54 = vpop.f32.mrf.mxu1  ;;  %v4377_v55 = vmul.f32 -1.442695, %v2623_v53 }
 0x310   :  { %4736 = vpow2.f32 %v4377_v55 }
 0x311   :  { %v4735_v56 = vpop.eup %4734  ;;  %v2611_v57 = vpop.f32.mrf.mxu2 }
 0x312   :  { %v2833_v58 = vadd.f32 1.0, %v4735_v56 }
 0x313   :  { %v2624_v59 = vpop.f32.mrf.mxu3 }
 0x314   :  { %4738 = vrcp.f32 %v2833_v58  ;;  %v2866_v63 = vand.u32 2147483648, %v2833_v58  ;;  %vm2860_vm1 = vweird.f32 %v2833_v58  ;;  %v2864_v4 = vand.u32 2147483647, %v2833_v58 }
 0x315   :  { %v1948_v59 = vperm.slane %v5616_v44, 4 }
 0x316   :  { %v4737_v60 = vpop.eup %4736  ;;  %v2867_v24 = vor.u32 1.1754944e-38, %v2866_v63  ;;  %vm2865_vm4 = vcmp.eq.f32.partialorder %v2864_v4, 8.507059e+37 }
 0x317   :  { %v2832_v61 = vadd.f32 1.0, %v4737_v60 }
 0x319   :  { %4740 = vrcp.f32 %v2832_v61  ;;  %v2851_v11 = vand.u32 2147483648, %v2832_v61  ;;  %vm2845_vm5 = vweird.f32 %v2832_v61  ;;  %v2849_v13 = vand.u32 2147483647, %v2832_v61 }
 0x31a   :  { %v4739_v21 = vpop.eup %4738 }
 0x31b   :  { %v2856_v62 = vmul.f32 %v4739_v21, %v2833_v58  ;;  %vm2861_vm2 = vweird.f32 %v4739_v21  ;;  %v2852_v3 = vor.u32 1.1754944e-38, %v2851_v11  ;;  %vm2850_vm8 = vcmp.eq.f32.partialorder %v2849_v13, 8.507059e+37 }
 0x31c   :  { %vm2862_vm3 = vmor %vm2860_vm1, %vm2861_vm2 }
 0x31d   :  { %v2857_v0 = vsub.f32 1.0, %v2856_v62 }
 0x31f   :  { %v4741_v5 = vpop.eup %4740  ;;  %v2858_v6 = vmul.f32 %v4739_v21, %v2857_v0 }
 0x320   :  { %v2841_v10 = vmul.f32 %v4741_v5, %v2832_v61  ;;  %vm2846_vm6 = vweird.f32 %v4741_v5 }
 0x321   :  { %v2859_v23 = vadd.f32 %v4739_v21, %v2858_v6  ;;  %vm2847_vm7 = vmor %vm2845_vm5, %vm2846_vm6 }
 0x322   :  { %v2842_v26 = vsub.f32 1.0, %v2841_v10 }
 0x323   :  { %v2863_v15 = vsel %vm2862_vm3, %v4739_v21, %v2859_v23 }
 0x324   :  { %v2687_v14 = vpop.f32.mrf.mxu0  ;;  %v2843_v17 = vmul.f32 %v4741_v5, %v2842_v26  ;;  %v2868_v18 = vsel %vm2865_vm4, %v2867_v24, %v2863_v15 }
 0x325   :  { %v2688_v31 = vadd.f32 %v2687_v14, %v1947_v7  ;;  %2961 = vst [vmem:[%s5678_s15 + $0x8] sm:$0xff] %v2868_v18 }
 0x326   :  { %v2700_v16 = vpop.f32.mrf.mxu1  ;;  %v2844_v28 = vadd.f32 %v4741_v5, %v2843_v17 }
 0x327   :  { %v2701_v9 = vadd.f32 %v2700_v16, %v2688_v31 }
 0x328   :  { %v2848_v20 = vsel %vm2847_vm7, %v4741_v5, %v2844_v28 }
 0x329   :  { %v2661_v29 = vpop.f32.mrf.mxu2  ;;  %v4380_v30 = vmul.f32 -1.442695, %v2701_v9  ;;  %v2853_v33 = vsel %vm2850_vm8, %v2852_v3, %v2848_v20  ;;  %v1951_v9 = vperm.slane %v5616_v44, 7 }
 0x32a   :  { %v2662_v32 = vadd.f32 %v2661_v29, %v1946_v2  ;;  %2960 = vst [vmem:[%s5678_s15] sm:$0xff] %v2853_v33 }
 0x32b   :  { %v2674_v25 = vpop.f32.mrf.mxu3  ;;  %4742 = vpow2.f32 %v4380_v30 }
 0x32c   :  { %v2675_v34 = vadd.f32 %v2674_v25, %v2662_v32  ;;  %v2689_v35 = vpop.f32.mrf.mxu0 }
 0x32e   :  { %v2702_v36 = vpop.f32.mrf.mxu1  ;;  %v4379_v22 = vmul.f32 -1.442695, %v2675_v34 }
 0x330   :  { %4744 = vpow2.f32 %v4379_v22 }
 0x331   :  { %v4743_v27 = vpop.eup %4742  ;;  %v2663_v37 = vpop.f32.mrf.mxu2 }
 0x332   :  { %v2835_v38 = vadd.f32 1.0, %v4743_v27 }
 0x333   :  { %v2676_v39 = vpop.f32.mrf.mxu3 }
 0x334   :  { %4746 = vrcp.f32 %v2835_v38  ;;  %v2896_v43 = vand.u32 2147483648, %v2835_v38  ;;  %vm2890_vm9 = vweird.f32 %v2835_v38  ;;  %v2894_v45 = vand.u32 2147483647, %v2835_v38 }
 0x336   :  { %v4745_v41 = vpop.eup %4744  ;;  %v2897_v49 = vor.u32 1.1754944e-38, %v2896_v43  ;;  %vm2895_vm12 = vcmp.eq.f32.partialorder %v2894_v45, 8.507059e+37 }
 0x337   :  { %v2834_v8 = vadd.f32 1.0, %v4745_v41 }
 0x339   :  { %4748 = vrcp.f32 %v2834_v8  ;;  %v2881_v50 = vand.u32 2147483648, %v2834_v8  ;;  %vm2875_vm13 = vweird.f32 %v2834_v8  ;;  %v2879_v53 = vand.u32 2147483647, %v2834_v8 }
 0x33a   :  { %v4747_v1 = vpop.eup %4746 }
 0x33b   :  { %v2886_v42 = vmul.f32 %v4747_v1, %v2835_v38  ;;  %vm2891_vm10 = vweird.f32 %v4747_v1  ;;  %v2882_v60 = vor.u32 1.1754944e-38, %v2881_v50  ;;  %vm2880_vm0 = vcmp.eq.f32.partialorder %v2879_v53, 8.507059e+37 }
 0x33c   :  { %vm2892_vm11 = vmor %vm2890_vm9, %vm2891_vm10  ;;  %v1950_v38 = vperm.slane %v5616_v44, 6 }
 0x33d   :  { %v2887_v40 = vsub.f32 1.0, %v2886_v42 }
 0x33f   :  { %v4749_v47 = vpop.eup %4748  ;;  %v2888_v46 = vmul.f32 %v4747_v1, %v2887_v40 }
 0x340   :  { %v2871_v48 = vmul.f32 %v4749_v47, %v2834_v8  ;;  %vm2876_vm14 = vweird.f32 %v4749_v47 }
 0x341   :  { %v2889_v51 = vadd.f32 %v4747_v1, %v2888_v46  ;;  %vm2877_vm15 = vmor %vm2875_vm13, %vm2876_vm14 }
 0x342   :  { %v2872_v52 = vsub.f32 1.0, %v2871_v48 }
 0x343   :  { %v2893_v54 = vsel %vm2892_vm11, %v4747_v1, %v2889_v51 }
 0x344   :  { %v2739_v12 = vpop.f32.mrf.mxu0  ;;  %v2873_v57 = vmul.f32 %v4749_v47, %v2872_v52  ;;  %v2898_v58 = vsel %vm2895_vm12, %v2897_v49, %v2893_v54 }
 0x345   :  { %v2740_v55 = vadd.f32 %v2739_v12, %v1949_v19  ;;  %2963 = vst [vmem:[%s5678_s15 + $0x18] sm:$0xff] %v2898_v58 }
 0x346   :  { %v2752_v56 = vpop.f32.mrf.mxu1  ;;  %v2874_v21 = vadd.f32 %v4749_v47, %v2873_v57 }
 0x347   :  { %v2753_v61 = vadd.f32 %v2752_v56, %v2740_v55 }
 0x348   :  { %v2878_v0 = vsel %vm2877_vm15, %v4749_v47, %v2874_v21 }
 0x349   :  { %v2713_v62 = vpop.f32.mrf.mxu2  ;;  %v4382_v63 = vmul.f32 -1.442695, %v2753_v61  ;;  %v2883_v6 = vsel %vm2880_vm0, %v2882_v60, %v2878_v0 }
 0x34a   :  { %v2714_v4 = vadd.f32 %v2713_v62, %v1948_v59  ;;  %2962 = vst [vmem:[%s5678_s15 + $0x10] sm:$0xff] %v2883_v6 }
 0x34b   :  { %v2726_v5 = vpop.f32.mrf.mxu3  ;;  %4750 = vpow2.f32 %v4382_v63 }
 0x34c   :  { %v2727_v7 = vadd.f32 %v2726_v5, %v2714_v4  ;;  %v2741_v10 = vpop.f32.mrf.mxu0 }
 0x34e   :  { %v2754_v24 = vpop.f32.mrf.mxu1  ;;  %v4381_v11 = vmul.f32 -1.442695, %v2727_v7 }
 0x350   :  { %4752 = vpow2.f32 %v4381_v11 }
 0x351   :  { %v4751_v23 = vpop.eup %4750  ;;  %v2715_v26 = vpop.f32.mrf.mxu2 }
 0x352   :  { %v2837_v13 = vadd.f32 1.0, %v4751_v23 }
 0x353   :  { %v2728_v14 = vpop.f32.mrf.mxu3 }
 0x354   :  { %4754 = vrcp.f32 %v2837_v13  ;;  %v2926_v18 = vand.u32 2147483648, %v2837_v13  ;;  %vm2920_vm1 = vweird.f32 %v2837_v13  ;;  %v2924_v3 = vand.u32 2147483647, %v2837_v13 }
 0x356   :  { %v4753_v15 = vpop.eup %4752  ;;  %v2927_v32 = vor.u32 1.1754944e-38, %v2926_v18  ;;  %vm2925_vm5 = vcmp.eq.f32.partialorder %v2924_v3, 8.507059e+37 }
 0x357   :  { %v2836_v31 = vadd.f32 1.0, %v4753_v15 }
 0x359   :  { %4756 = vrcp.f32 %v2836_v31  ;;  %vm2905_vm4 = vweird.f32 %v2836_v31  ;;  %v2911_v25 = vand.u32 2147483648, %v2836_v31  ;;  %v2909_v36 = vand.u32 2147483647, %v2836_v31 }
 0x35a   :  { %v4755_v16 = vpop.eup %4754 }
 0x35b   :  { %v2916_v17 = vmul.f32 %v4755_v16, %v2837_v13  ;;  %vm2921_vm2 = vweird.f32 %v4755_v16  ;;  %v2912_v1 = vor.u32 1.1754944e-38, %v2911_v25  ;;  %vm2910_vm8 = vcmp.eq.f32.partialorder %v2909_v36, 8.507059e+37 }
 0x35c   :  { %vm5643_vm3 = vmor %vm2920_vm1, %vm2921_vm2 }
 0x35d   :  { %v2917_v2 = vsub.f32 1.0, %v2916_v17 }
 0x35f   :  { %v4757_v28 = vpop.eup %4756  ;;  %v2918_v29 = vmul.f32 %v4755_v16, %v2917_v2 }
 0x360   :  { %v2901_v30 = vmul.f32 %v4757_v28, %v2836_v31  ;;  %vm2906_vm6 = vweird.f32 %v4757_v28 }
 0x361   :  { %v2919_v33 = vadd.f32 %v4755_v16, %v2918_v29  ;;  %vm2907_vm7 = vmor %vm2905_vm4, %vm2906_vm6 }
 0x362   :  { %v2902_v35 = vsub.f32 1.0, %v2901_v30 }
 0x363   :  { %v2923_v37 = vsel %vm5643_vm3, %v4755_v16, %v2919_v33 }
 0x364   :  { %v2791_v34 = vpop.f32.mrf.mxu0  ;;  %v2903_v39 = vmul.f32 %v4757_v28, %v2902_v35  ;;  %v2928_v41 = vsel %vm2925_vm5, %v2927_v32, %v2923_v37 }
 0x365   :  { %v2792_v22 = vadd.f32 %v2791_v34, %v1951_v9  ;;  %2965 = vst [vmem:[%s5678_s15 + $0x28] sm:$0xff] %v2928_v41 }
 0x366   :  { %v2804_v27 = vpop.f32.mrf.mxu1  ;;  %v2904_v42 = vadd.f32 %v4757_v28, %v2903_v39 }
 0x367   :  { %v2805_v8 = vadd.f32 %v2804_v27, %v2792_v22 }
 0x368   :  { %v2908_v46 = vsel %vm2907_vm7, %v4757_v28, %v2904_v42 }
 0x369   :  { %v4384_v43 = vmul.f32 -1.442695, %v2805_v8  ;;  %v2765_v40 = vpop.f32.mrf.mxu2  ;;  %v2913_v19 = vsel %vm2910_vm8, %v2912_v1, %v2908_v46 }
 0x36a   :  { %v2766_v45 = vadd.f32 %v2765_v40, %v1950_v38  ;;  %2964 = vst [vmem:[%s5678_s15 + $0x20] sm:$0xff] %v2913_v19 }
 0x36b   :  { %v2778_v47 = vpop.f32.mrf.mxu3  ;;  %4758 = vpow2.f32 %v4384_v43 }
 0x36c   :  { %v2779_v44 = vadd.f32 %v2778_v47, %v2766_v45  ;;  %v2793_v48 = vpop.f32.mrf.mxu0 }
 0x36e   :  { %v2806_v49 = vpop.f32.mrf.mxu1  ;;  %v4383_v50 = vmul.f32 -1.442695, %v2779_v44 }
 0x370   :  { %4760 = vpow2.f32 %v4383_v50 }
 0x371   :  { %v4759_v51 = vpop.eup %4758  ;;  %v2767_v52 = vpop.f32.mrf.mxu2 }
 0x372   :  { %v2839_v53 = vadd.f32 1.0, %v4759_v51 }
 0x373   :  { %v2780_v12 = vpop.f32.mrf.mxu3 }
 0x374   :  { %4762 = vrcp.f32 %v2839_v53  ;;  %v2956_v59 = vand.u32 2147483648, %v2839_v53  ;;  %vm2950_vm9 = vweird.f32 %v2839_v53  ;;  %v2954_v21 = vand.u32 2147483647, %v2839_v53 }
 0x376   :  { %v4761_v54 = vpop.eup %4760  ;;  %v2957_v0 = vor.u32 1.1754944e-38, %v2956_v59  ;;  %vm2955_vm12 = vcmp.eq.f32.partialorder %v2954_v21, 8.507059e+37 }
 0x377   :  { %v2838_v55 = vadd.f32 1.0, %v4761_v54 }
 0x379   :  { %4764 = vrcp.f32 %v2838_v55  ;;  %v2941_v6 = vand.u32 2147483648, %v2838_v55  ;;  %v2939_v24 = vand.u32 2147483647, %v2838_v55  ;;  %vm2935_vm14 = vweird.f32 %v2838_v55 }
 0x37a   :  { %v4763_v56 = vpop.eup %4762 }
 0x37b   :  { %v2946_v57 = vmul.f32 %v4763_v56, %v2839_v53  ;;  %vm2951_vm10 = vweird.f32 %v4763_v56  ;;  %v2942_v23 = vor.u32 1.1754944e-38, %v2941_v6  ;;  %vm2940_vm0 = vcmp.eq.f32.partialorder %v2939_v24, 8.507059e+37 }
 0x37c   :  { %vm2952_vm11 = vmor %vm2950_vm9, %vm2951_vm10 }
 0x37d   :  { %v2947_v58 = vsub.f32 1.0, %v2946_v57 }
 0x37f   :  { %v4765_v60 = vpop.eup %4764  ;;  %v2948_v61 = vmul.f32 %v4763_v56, %v2947_v58 }
 0x380   :  { %v2931_v62 = vmul.f32 %v4765_v60, %v2838_v55  ;;  %vm2936_vm13 = vweird.f32 %v4765_v60 }
 0x381   :  { %v2949_v63 = vadd.f32 %v4763_v56, %v2948_v61  ;;  %vm2937_vm15 = vmor %vm2935_vm14, %vm2936_vm13 }
 0x382   :  { %v2932_v4 = vsub.f32 1.0, %v2931_v62 }
 0x383   :  { %v2953_v5 = vsel %vm2952_vm11, %v4763_v56, %v2949_v63 }
 0x384   :  { %v2958_v7 = vsel %vm2955_vm12, %v2957_v0, %v2953_v5  ;;  %v2933_v10 = vmul.f32 %v4765_v60, %v2932_v4 }
 0x385   :  { %2967 = vst [vmem:[%s5678_s15 + $0x38] sm:$0xff] %v2958_v7 }
 0x386   :  { %v2934_v11 = vadd.f32 %v4765_v60, %v2933_v10 }
 0x388   :  { %v2938_v26 = vsel %vm2937_vm15, %v4765_v60, %v2934_v11 }
 0x389   :  { %v2943_v13 = vsel %vm2940_vm0, %v2942_v23, %v2938_v26 }
 0x38a   :  { %2966 = vst [vmem:[%s5678_s15 + $0x30] sm:$0xff] %v2943_v13 }
 0x38b   :  { %4866 = dma.done.wait [#allocation6], 128  }
 0x38c   :  { %4867 = vsyncadd [#allocation6], 4294967168 }
 0x38d   :  { %4868 = dma.done.wait [#allocation9], 128  }
 0x38e   :  { %4869 = vsyncadd [#allocation9], 4294967168 }
 0x38f   :  { %3004 = vsyncpa [#allocation5], 1 }
 0x390   :  { %3005 = vsyncpa [#allocation6], 1 }
 0x391   :  { %3006 = vsyncpa [#allocation9], 1 }
 0x392   :  { %3007 = vsyncmov [#allocation3] }
 0x395   :  { %s3008_s3 = vpop.sfrf %3007 }
 0x396   :  { %p4385_p0 = scmp.ne.s32.totalorder %s3008_s3, 0 }
 0x398   :  { %3012 = shalt.err (%p4385_p0)  }

</bundles_post_ra>
